<compile_context>
chip_gen: v7x
topology: tpu7x:2x2x1
jax: 0.10.0
libtpu: 0.0.40
codegen_flags: <defaults>
</compile_context>

<pallas_src>
import math
import functools

import jax
import jax.numpy as jnp
from jax.experimental import pallas as pl
from jax.experimental.pallas import tpu as pltpu


def gcn_kernel(adj_ref, x_ref, wt_ref, gamma_ref, beta_ref, o_ref, acc_ref, *, tm, tk):
    # adj_ref:   (TM, TK)    adj tile, native dtype (cast to compute dtype in-kernel)
    # x_ref:     (Npad, D)   whole x slab for this batch, resident in VMEM (native dtype)
    # wt_ref:    (D, D)      W^T, i.e. (in, out) layout, compute dtype
    # gamma_ref/beta_ref: (1, D) f32 LN params
    # o_ref:     (TM, D)     output row tile
    # acc_ref:   (TM, D) f32 scratch accumulator for s = adj @ x
    i = pl.program_id(1)
    k = pl.program_id(2)
    cdt = wt_ref.dtype  # MXU compute dtype

    @pl.when(k == 0)
    def _init():
        acc_ref[...] = jnp.zeros_like(acc_ref)

    # Hot path: s += adj_tile @ x_ktile.  The x k-tile is sliced from the resident
    # per-batch slab (no per-row-tile re-DMA of x); casts run on the VPU and are hidden
    # under the adj HBM DMA, which is the binding resource.
    k_start = pl.multiple_of(k * tk, tk)
    xk = x_ref[pl.ds(k_start, tk), :].astype(cdt)
    acc_ref[...] += jnp.dot(adj_ref[...].astype(cdt), xk,
                            preferred_element_type=jnp.float32)

    @pl.when(k == pl.num_programs(2) - 1)
    def _finalize():
        s = acc_ref[...]                                    # (TM, D) = (adj @ x) tile, f32
        # ctx = (adj @ x) @ W^T == adj @ (x @ W^T).  W^T pre-transposed host-side -> plain
        # (1,)x(0,) contraction, no in-kernel transpose of the weight.
        ctx = jnp.dot(s.astype(cdt), wt_ref[...], preferred_element_type=jnp.float32)

        # Residual rows come from the same resident x slab (dropout p = 0.0 -> identity).
        i_start = pl.multiple_of(i * tm, tm)
        node = x_ref[pl.ds(i_start, tm), :].astype(jnp.float32) + ctx

        # LayerNorm over features (eps = 1e-5, PyTorch default).
        mean = jnp.mean(node, axis=-1, keepdims=True)
        centered = node - mean
        var = jnp.mean(centered * centered, axis=-1, keepdims=True)
        normed = centered * jax.lax.rsqrt(var + 1e-5)
        o_ref[...] = (normed * gamma_ref[...] + beta_ref[...]).astype(o_ref.dtype)


def _round_up(v, m):
    return (v + m - 1) // m * m


def _choose_tile(n, target):
    """Largest multiple of 128 that divides n (n must be a multiple of 128) and is <= target."""
    t = max(128, min(target, n))
    t -= t % 128
    while n % t != 0:
        t -= 128
    return t


def gcn_conv(x, adj, weight, gamma, beta, *, tm=512, tk=1024,
             compute_dtype=jnp.bfloat16, adj_buffers=3):
    """x: (bs, N, D); adj: (bs, N, N); weight: (D, D) torch-style (out, in)."""
    bs, n, d = x.shape
    assert adj.shape == (bs, n, n)
    assert weight.shape == (d, d)

    # Pad the node axis to a multiple of 128 so tiling/pipelining always holds.
    # Padded rows/cols are zero -> real rows are unaffected; padded output rows are sliced off.
    n_pad = _round_up(n, 128)
    if n_pad != n:
        x_p = jnp.pad(x, ((0, 0), (0, n_pad - n), (0, 0)))
        adj_p = jnp.pad(adj, ((0, 0), (0, n_pad - n), (0, n_pad - n)))
    else:
        x_p, adj_p = x, adj

    tm = _choose_tile(n_pad, tm)
    tk = _choose_tile(n_pad, tk)
    n_i = n_pad // tm
    n_k = n_pad // tk

    # One-off host-side prep of the tiny operands: W^T (in, out) in the compute dtype,
    # LN params as (1, D) f32.  (adj and x are passed through untouched — no cast pass.)
    wt = jnp.asarray(weight).T.astype(compute_dtype)
    gamma2 = jnp.asarray(gamma).reshape(1, d).astype(jnp.float32)
    beta2 = jnp.asarray(beta).reshape(1, d).astype(jnp.float32)

    adj_bytes = adj_p.dtype.itemsize
    x_bytes = x_p.dtype.itemsize
    c_bytes = jnp.dtype(compute_dtype).itemsize

    flops = 2 * bs * (n_pad * n_pad * d + n_pad * d * d)
    bytes_accessed = (bs * n_pad * n_pad * adj_bytes      # adj, read exactly once
                      + bs * n_pad * d * x_bytes          # x slab, read once per batch
                      + bs * n_pad * d * x_bytes          # output
                      + d * d * c_bytes + 2 * d * 4)      # weight + LN params
    cost = pl.CostEstimate(flops=int(flops), transcendentals=int(bs * n_pad),
                           bytes_accessed=int(bytes_accessed))

    def build_and_run(buffers):
        adj_imap = lambda b, i, k: (b, i, k)
        if buffers != 2:
            try:
                adj_spec = pl.BlockSpec((None, tm, tk), adj_imap,
                                        pipeline_mode=pl.Buffered(buffers))
            except TypeError:  # jax version without pipeline_mode on BlockSpec
                adj_spec = pl.BlockSpec((None, tm, tk), adj_imap)
                buffers = 2
        else:
            adj_spec = pl.BlockSpec((None, tm, tk), adj_imap)

        vmem_bytes = (buffers * tm * tk * adj_bytes      # adj pipeline
                      + 2 * n_pad * d * x_bytes          # resident x slab (double-buffered)
                      + 2 * d * d * c_bytes              # weight
                      + 2 * 2 * d * 4                    # LN params
                      + 2 * tm * d * x_bytes             # output tile
                      + tm * d * 4)                      # f32 accumulator
        vmem_limit = max(int(1.25 * vmem_bytes) + 2 * 2 ** 20, 8 * 2 ** 20)
        vmem_limit = int(min(vmem_limit, 40 * 2 ** 20))  # stays inside v7x's 64 MiB / TC

        return pl.pallas_call(
            functools.partial(gcn_kernel, tm=tm, tk=tk),
            out_shape=jax.ShapeDtypeStruct((bs, n_pad, d), x.dtype),
            grid_spec=pltpu.PrefetchScalarGridSpec(
                num_scalar_prefetch=0,
                grid=(bs, n_i, n_k),
                in_specs=[
                    adj_spec,                                                    # adj tile
                    pl.BlockSpec((None, n_pad, d), lambda b, i, k: (b, 0, 0)),   # x slab / batch
                    pl.BlockSpec((d, d), lambda b, i, k: (0, 0)),                # W^T (in, out)
                    pl.BlockSpec((1, d), lambda b, i, k: (0, 0)),                # LN gamma
                    pl.BlockSpec((1, d), lambda b, i, k: (0, 0)),                # LN beta
                ],
                out_specs=pl.BlockSpec((None, tm, d), lambda b, i, k: (b, i, 0)),
                scratch_shapes=[pltpu.VMEM((tm, d), jnp.float32)],
            ),
            compiler_params=pltpu.CompilerParams(
                dimension_semantics=("parallel", "parallel", "arbitrary"),
                vmem_limit_bytes=vmem_limit,
            ),
            cost_estimate=cost,
        )(adj_p, x_p, wt, gamma2, beta2)

    if adj_buffers != 2:
        try:
            out = build_and_run(adj_buffers)
        except Exception:           # graceful fallback to default double-buffering
            out = build_and_run(2)
    else:
        out = build_and_run(2)

    return out[:, :n, :] if n_pad != n else out


def gcn_ref(x, adj, weight, gamma, beta):
    h = jnp.einsum('bnd,ed->bne', x, weight, precision='highest')    # Linear (no bias)
    node = x + jnp.einsum('bnm,bmd->bnd', adj, h, precision='highest')
    mean = jnp.mean(node, axis=-1, keepdims=True)
    var = jnp.mean((node - mean) ** 2, axis=-1, keepdims=True)
    return (node - mean) * jax.lax.rsqrt(var + 1e-5) * gamma + beta


if __name__ == "__main__":
    key = jax.random.PRNGKey(0)
    bs, num_nodes, dim_hidden = 2, 256, 128   # D = 128 -> lane-dense feature/output axis

    kx, kadj, kw = jax.random.split(key, 3)
    x = jax.random.normal(kx, (bs, num_nodes, dim_hidden), dtype=jnp.float32)
    adj = jax.random.uniform(kadj, (bs, num_nodes, num_nodes), dtype=jnp.float32)

    # kaiming_normal_ on (out=D, in=D): std = sqrt(2 / fan_in)
    weight = jax.random.normal(kw, (dim_hidden, dim_hidden), dtype=jnp.float32) \
             * math.sqrt(2.0 / dim_hidden)
    gamma = jnp.ones((dim_hidden,), dtype=jnp.float32)    # LayerNorm weight
    beta = jnp.zeros((dim_hidden,), dtype=jnp.float32)    # LayerNorm bias

    ref = gcn_ref(x, adj, weight, gamma, beta)

    # Tight semantic check with the f32 compute path (same tiling / accumulator code path).
    out_f32 = gcn_conv(x, adj, weight, gamma, beta, compute_dtype=jnp.float32)
    jax.block_until_ready(out_f32)
    assert out_f32.shape == (bs, num_nodes, dim_hidden)
    assert jnp.allclose(out_f32, ref, atol=5e-3, rtol=5e-3), \
        f"f32 path max abs err {jnp.max(jnp.abs(out_f32 - ref))}"

    # Default bf16-MXU path (f32 accumulation): looser tolerance for bf16 rounding.
    out = gcn_conv(x, adj, weight, gamma, beta)
    jax.block_until_ready(out)
    assert out.shape == (bs, num_nodes, dim_hidden)
    assert jnp.allclose(out, ref, atol=8e-2, rtol=8e-2), \
        f"bf16 path max abs err {jnp.max(jnp.abs(out - ref))}"

    print("KERNEL_OK")
</pallas_src>

<mosaic_0001>
module attributes {stable_mosaic.version = 11 : i64} {
  func.func @gcn_kernel(%arg0: i32, %arg1: i32, %arg2: i32, %arg3: memref<1x256x256xf32, #tpu.memory_space<vmem>>, %arg4: memref<1x256x128xf32, #tpu.memory_space<vmem>>, %arg5: memref<128x128xf32, #tpu.memory_space<vmem>>, %arg6: memref<1x128xf32, #tpu.memory_space<vmem>>, %arg7: memref<1x128xf32, #tpu.memory_space<vmem>>, %arg8: memref<1x256x128xf32, #tpu.memory_space<vmem>>, %arg9: memref<256x128xf32, #tpu.memory_space<vmem>>) attributes {dimension_semantics = [#tpu.dimension_semantics<parallel>, #tpu.dimension_semantics<parallel>, #tpu.dimension_semantics<arbitrary>], iteration_bounds = array<i64: 2, 1, 1>, scalar_prefetch = 0 : i64, scratch_operands = 1 : i64, tpu.core_type = #tpu.core_type<tc>, window_params = [{transform_indices = @transform_0, window_bounds = array<i64: 1, 256, 256>}, {transform_indices = @transform_1, window_bounds = array<i64: 1, 256, 128>}, {pipeline_mode = #tpu.pipeline_mode<synchronous>, transform_indices = @transform_2, window_bounds = array<i64: 128, 128>}, {pipeline_mode = #tpu.pipeline_mode<synchronous>, transform_indices = @transform_3, window_bounds = array<i64: 1, 128>}, {pipeline_mode = #tpu.pipeline_mode<synchronous>, transform_indices = @transform_4, window_bounds = array<i64: 1, 128>}, {transform_indices = @transform_5, window_bounds = array<i64: 1, 256, 128>}]} {
    %c0_i32 = arith.constant 0 : i32
    %0 = arith.cmpi eq, %arg2, %c0_i32 : i32
    %1 = arith.extui %0 : i1 to i32
    %c0_i32_0 = arith.constant 0 : i32
    %2 = arith.cmpi ne, %1, %c0_i32_0 : i32
    scf.if %2 {
      %cst_11 = arith.constant 0.000000e+00 : f32
      %17 = vector.broadcast %cst_11 : f32 to vector<256x128xf32>
      %c0_12 = arith.constant 0 : index
      %c0_13 = arith.constant 0 : index
      %18 = vector.load %arg9[%c0_12, %c0_13] : memref<256x128xf32, #tpu.memory_space<vmem>>, vector<256x128xf32>
      tpu.vector_store %arg9[%c0_12, %c0_13], %17 {strides = array<i32>} : memref<256x128xf32, #tpu.memory_space<vmem>>, vector<256x128xf32>,
    } else {
    }
    %c256_i32 = arith.constant 256 : i32
    %3 = arith.muli %arg2, %c256_i32 : i32
    %4 = tpu.assume_multiple %3, 256 : i32
    %c0 = arith.constant 0 : index
    %5 = arith.index_cast %4 : i32 to index
    %c0_1 = arith.constant 0 : index
    %6 = vector.load %arg4[%c0, %5, %c0_1] : memref<1x256x128xf32, #tpu.memory_space<vmem>>, vector<1x256x128xf32>
    %7 = vector.shape_cast %6 : vector<1x256x128xf32> to vector<256x128xf32>
    %c0_2 = arith.constant 0 : index
    %c0_3 = arith.constant 0 : index
    %8 = vector.load %arg9[%c0_2, %c0_3] : memref<256x128xf32, #tpu.memory_space<vmem>>, vector<256x128xf32>
    %c0_4 = arith.constant 0 : index
    %c0_5 = arith.constant 0 : index
    %c0_6 = arith.constant 0 : index
    %9 = vector.load %arg3[%c0_4, %c0_5, %c0_6] : memref<1x256x256xf32, #tpu.memory_space<vmem>>, vector<1x256x256xf32>
    %10 = vector.shape_cast %9 : vector<1x256x256xf32> to vector<256x256xf32>
    %cst = arith.constant dense<0.000000e+00> : vector<256x128xf32>
    %11 = tpu.matmul %10, %7, %cst {dimension_numbers = #tpu.dot_dimension_numbers<[1], [0], [0], [1], [0, 0, 1, 1], [], []>} : vector<256x256xf32>, vector<256x128xf32>, vector<256x128xf32> -> vector<256x128xf32>
    %12 = arith.addf %8, %11 : vector<256x128xf32>
    %c0_7 = arith.constant 0 : index
    %c0_8 = arith.constant 0 : index
    %13 = vector.load %arg9[%c0_7, %c0_8] : memref<256x128xf32, #tpu.memory_space<vmem>>, vector<256x128xf32>
    tpu.vector_store %arg9[%c0_7, %c0_8], %12 {strides = array<i32>} : memref<256x128xf32, #tpu.memory_space<vmem>>, vector<256x128xf32>,
    %c0_i32_9 = arith.constant 0 : i32
    %14 = arith.cmpi eq, %arg2, %c0_i32_9 : i32
    %15 = arith.extui %14 : i1 to i32
    %c0_i32_10 = arith.constant 0 : i32
    %16 = arith.cmpi ne, %15, %c0_i32_10 : i32
    scf.if %16 {
      %c0_11 = arith.constant 0 : index
      %c0_12 = arith.constant 0 : index
      %17 = vector.load %arg9[%c0_11, %c0_12] : memref<256x128xf32, #tpu.memory_space<vmem>>, vector<256x128xf32>
      %c0_13 = arith.constant 0 : index
      %c0_14 = arith.constant 0 : index
      %18 = vector.load %arg5[%c0_13, %c0_14] : memref<128x128xf32, #tpu.memory_space<vmem>>, vector<128x128xf32>
      %cst_15 = arith.constant dense<0.000000e+00> : vector<256x128xf32>
      %19 = tpu.matmul %17, %18, %cst_15 {dimension_numbers = #tpu.dot_dimension_numbers<[1], [0], [0], [1], [0, 0, 1, 1], [], []>} : vector<256x128xf32>, vector<128x128xf32>, vector<256x128xf32> -> vector<256x128xf32>
      %c256_i32_16 = arith.constant 256 : i32
      %20 = arith.muli %arg1, %c256_i32_16 : i32
      %21 = tpu.assume_multiple %20, 256 : i32
      %c0_17 = arith.constant 0 : index
      %22 = arith.index_cast %21 : i32 to index
      %c0_18 = arith.constant 0 : index
      %23 = vector.load %arg4[%c0_17, %22, %c0_18] : memref<1x256x128xf32, #tpu.memory_space<vmem>>, vector<1x256x128xf32>
      %24 = vector.shape_cast %23 : vector<1x256x128xf32> to vector<256x128xf32>
      %25 = arith.addf %24, %19 : vector<256x128xf32>
      %cst_19 = arith.constant dense<0.000000e+00> : vector<256xf32>
      %26 = vector.multi_reduction <add>, %25, %cst_19 [1] : vector<256x128xf32> to vector<256xf32>
      %27 = vector.shape_cast %26 : vector<256xf32> to vector<256x1xf32>
      %cst_20 = arith.constant 1.280000e+02 : f32
      %28 = vector.broadcast %cst_20 : f32 to vector<256x1xf32>
      %29 = arith.divf %27, %28 : vector<256x1xf32>
      %30 = vector.broadcast %29 : vector<256x1xf32> to vector<256x128xf32>
      %31 = arith.subf %25, %30 : vector<256x128xf32>
      %32 = arith.mulf %31, %31 : vector<256x128xf32>
      %cst_21 = arith.constant dense<0.000000e+00> : vector<256xf32>
      %33 = vector.multi_reduction <add>, %32, %cst_21 [1] : vector<256x128xf32> to vector<256xf32>
      %34 = vector.shape_cast %33 : vector<256xf32> to vector<256x1xf32>
      %cst_22 = arith.constant 1.280000e+02 : f32
      %35 = vector.broadcast %cst_22 : f32 to vector<256x1xf32>
      %36 = arith.divf %34, %35 : vector<256x1xf32>
      %cst_23 = arith.constant 9.99999974E-6 : f32
      %37 = vector.broadcast %cst_23 : f32 to vector<256x1xf32>
      %38 = arith.addf %36, %37 : vector<256x1xf32>
      %39 = math.rsqrt %38 : vector<256x1xf32>
      %40 = vector.broadcast %39 : vector<256x1xf32> to vector<256x128xf32>
      %41 = arith.mulf %31, %40 : vector<256x128xf32>
      %c0_24 = arith.constant 0 : index
      %c0_25 = arith.constant 0 : index
      %42 = vector.load %arg6[%c0_24, %c0_25] : memref<1x128xf32, #tpu.memory_space<vmem>>, vector<1x128xf32>
      %43 = vector.broadcast %42 : vector<1x128xf32> to vector<256x128xf32>
      %44 = arith.mulf %41, %43 : vector<256x128xf32>
      %c0_26 = arith.constant 0 : index
      %c0_27 = arith.constant 0 : index
      %45 = vector.load %arg7[%c0_26, %c0_27] : memref<1x128xf32, #tpu.memory_space<vmem>>, vector<1x128xf32>
      %46 = vector.broadcast %45 : vector<1x128xf32> to vector<256x128xf32>
      %47 = arith.addf %44, %46 : vector<256x128xf32>
      %c0_28 = arith.constant 0 : index
      %c0_29 = arith.constant 0 : index
      %c0_30 = arith.constant 0 : index
      %48 = vector.load %arg8[%c0_28, %c0_29, %c0_30] : memref<1x256x128xf32, #tpu.memory_space<vmem>>, vector<1x256x128xf32>
      %49 = vector.shape_cast %48 : vector<1x256x128xf32> to vector<256x128xf32>
      %50 = vector.shape_cast %47 : vector<256x128xf32> to vector<1x256x128xf32>
      tpu.vector_store %arg8[%c0_28, %c0_29, %c0_30], %50 {strides = array<i32>} : memref<1x256x128xf32, #tpu.memory_space<vmem>>, vector<1x256x128xf32>,
    } else {
    }
    return
  }
  func.func @transform_0(%arg0: i32, %arg1: i32, %arg2: i32) -> (i32, i32, i32) {
    %c0_i32 = arith.constant 0 : i32
    return %arg0, %arg1, %arg2 : i32, i32, i32
  }
  func.func @transform_1(%arg0: i32, %arg1: i32, %arg2: i32) -> (i32, i32, i32) {
    %c0_i32 = arith.constant 0 : i32
    %c0_i32_0 = arith.constant 0 : i32
    %c0_i32_1 = arith.constant 0 : i32
    return %arg0, %c0_i32, %c0_i32_0 : i32, i32, i32
  }
  func.func @transform_2(%arg0: i32, %arg1: i32, %arg2: i32) -> (i32, i32) {
    %c0_i32 = arith.constant 0 : i32
    %c0_i32_0 = arith.constant 0 : i32
    %c0_i32_1 = arith.constant 0 : i32
    return %c0_i32, %c0_i32_0 : i32, i32
  }
  func.func @transform_3(%arg0: i32, %arg1: i32, %arg2: i32) -> (i32, i32) {
    %c0_i32 = arith.constant 0 : i32
    %c0_i32_0 = arith.constant 0 : i32
    %c0_i32_1 = arith.constant 0 : i32
    return %c0_i32, %c0_i32_0 : i32, i32
  }
  func.func @transform_4(%arg0: i32, %arg1: i32, %arg2: i32) -> (i32, i32) {
    %c0_i32 = arith.constant 0 : i32
    %c0_i32_0 = arith.constant 0 : i32
    %c0_i32_1 = arith.constant 0 : i32
    return %c0_i32, %c0_i32_0 : i32, i32
  }
  func.func @transform_5(%arg0: i32, %arg1: i32, %arg2: i32) -> (i32, i32, i32) {
    %c0_i32 = arith.constant 0 : i32
    %c0_i32_0 = arith.constant 0 : i32
    return %arg0, %arg1, %c0_i32 : i32, i32, i32
  }
}

</mosaic_0001>

<bundles_post_ra>
// kernel: tpu_custom_call.1
= control target key start
LH: loop header
LB: loop body
LE: loop exit
PB: predicated region body
PF: predicated region fallthrough
CT: control target
= control target key end

     0   :  { %s3317_s0 = inlined_call_operand.hbm [shape: f32[2,256,256], index: 0, kind: input, shape index: {}]   ;;  %s3318_s1 = inlined_call_operand.hbm [shape: f32[2,256,128], index: 1, kind: input, shape index: {}]   ;;  %s3319_s2 = inlined_call_operand.hbm [shape: f32[128,128], index: 2, kind: input, shape index: {}]   ;;  %s3320_s3 = inlined_call_operand.vmem [shape: f32[1,128], index: 3, kind: input, shape index: {}]   ;;  %s3321_s4 = inlined_call_operand.vmem [shape: f32[1,128], index: 4, kind: input, shape index: {}]   ;;  %s3322_s5 = inlined_call_operand.hbm [shape: f32[2,256,128], index: 5, kind: output, shape index: {}]  }
   0x1   :  { %3330 = sst [smem:[#allocation17_spill]] %s3317_s0 }
   0x2   :  { %3331 = sst [smem:[#allocation18_spill]] %s3319_s2 }
   0x3   :  { %10 = vsyncpa [#allocation4], 0 }
   0x4   :  { %12 = vsyncpa [#allocation4 + $0x1], 0 }
   0x5   :  { %13 = vsyncpa [#allocation7], 0 }
   0x6   :  { %15 = vsyncpa [#allocation7 + $0x1], 0 }
   0x7   :  { %16 = vsyncpa [#allocation5], 0 }
   0x8   :  { %18 = vsyncpa [#allocation5 + $0x1], 0  ;;  %s2370_s18 = smov 0   ;;  %s2372_s19 = smov 0  }
   0x9   :  { %s2374_s20 = smov 0   ;;  %s2376_s21 = smov 0  }
   0xa   :  { %s2378_s22 = smov 0   ;;  %s2380_s23 = smov 0  }
   0xb LB: > { %3332 = sst [smem:[#allocation14_spill]] %s2315_s20  ;;  %s2401_s24 = sadd.s32 4294967295, %s2327_s23   ;;  %s2327_s23 = sphi %s2380_s23, %s24_s23   ;;  %s2323_s22 = sphi %s2378_s22, %s3360_s22   ;;  %s2319_s21 = sphi %s2376_s21, %s3359_s21   ;;  %s2315_s20 = sphi %s2374_s20, %s3355_s20   ;;  %s2311_s19 = sphi %s2372_s19, %s3358_s19   ;;  %s2307_s18 = sphi %s2370_s18, %s3357_s18  }
   0xc   : > { %s1735_s25 = sadd.s32 4294967294, %s2327_s23   ;;  %p67_p0 = scmp.ne.s32.totalorder %s2311_s19, %s2307_s18 }
   0xd   : > { %p3323_p1 = scmp.eq.s32.totalorder %s2401_s24, 0  ;;  %p188_p3 = scmp.eq.s32.totalorder %s1735_s25, 1 }
   0xe   : > { %p1736_p5 = scmp.ge.s32.totalorder %s2327_s23, 1  ;;  %p195_p7 = scmp.lt.s32.totalorder %s2327_s23, 3 }
   0xf   : > { %p2410_p4 = por %p3323_p1, %p67_p0  ;;  %p2415_p6 = por %p188_p3, %p67_p0 }
  0x10   : > { %p2420_p8 = pnand %p1736_p5, %p195_p7  ;;  %s2329_s29 = smov [#allocation8]  }
  0x11   : > { %s3333_s26 = scalar_select %p2410_p4, 1, 0 }
  0x12   : > { %s3334_s27 = scalar_select %p2415_p6, 1, 0 }
  0x13   : > { %s3335_s28 = scalar_select %p2420_p8, 1, 0 }
  0x14   : > { %s207_s30 = sshll.u32 %s2329_s29, 4  ;;  %p2010_p9 = pneg %p2420_p8  ;;  %s208_s30 = int_to_ptr.vmem [resolvable:$true] %s207_s30 }
  0x15   : > { %s43_s7 = sadd.s32 1, %s2323_s22  ;;  %s3337_s2 = sld [smem:[#allocation18_spill]] }
  0x16   : > { %p2429_p11 = pnand %p2010_p9, %p3323_p1 }
  0x18   : > { %p2151_p13 = pneg %p2429_p11 }
  0x1b   : > { %s2149_s10 = scalar_lea.hbm %s3337_s2, 2048 }
  0x1c   : > { %p2150_p12 = scmp.ne.s32.totalorder %s3337_s2, %s2149_s10  ;;  %p2156_p5 = scmp.lt.u32.totalorder %s2149_s10, %s3337_s2 }
  0x1e   : > { %p2152_p0 = pnand %p2151_p13, %p2150_p12 }
  0x20   : > { %p2153_p3 = pneg %p2152_p0 }
  0x22   : > { %p2158_p7 = pnand %p2156_p5, %p2153_p3 }
  0x24   : > { %2161 = shalt.err (!%p2158_p7)
}
  0x25   : > { %s2162_s15 = scalar_lea.vmem %s208_s30, 2048  ;;  %p2170_p2 = scmp.lt.s32.totalorder %s208_s30, %s208_s30 }
  0x26   : > { %p2163_p9 = scmp.ne.s32.totalorder %s208_s30, %s2162_s15  ;;  %p2171_p6 = scmp.lt.s32.totalorder %s2162_s15, %s2162_s15 }
  0x28   : > { %p2165_p10 = pnand %p2163_p9, %p2151_p13  ;;  %p2172_p4 = por %p2171_p6, %p2170_p2 }
  0x2a   : > { %p2166_p1 = pneg %p2165_p10 }
  0x2c   : > { %p2173_p8 = pnand %p2172_p4, %p2166_p1 }
  0x2e   : > { %2176 = shalt.err (!%p2173_p8)
}
  0x2f   : > { %s3326_s16 = smov 128   ;;  %s3327_s17 = smov 8  }
  0x30   : > { %2013 = dma.hbm_to_vmem [thread:$0]  (!%p2429_p11), %s3337_s2, 2048, %s208_s30, [#allocation7], %s3326_s16, %s3326_s16, %s3327_s17  }
  0x31   : > { %p45_p1 = scmp.ge.s32.totalorder %s43_s7, 2  ;;  %s54_s8 = sadd.s32 1, %s2315_s20 }
  0x32   : > { %p61_p2 = scmp.ne.s32.totalorder %s2315_s20, %s2311_s19  ;;  %p62_p4 = scmp.eq.s32.totalorder %s2327_s23, 0 }
  0x33   : > { %s3362_s7 = smov (%p45_p1, %s43_s7), 0  ;;  %p3340_p8 = scmp.eq.s32.totalorder %s2401_s24, 1 }
  0x34   : > { %3338 = sst [smem:[#allocation15_spill]] %s3362_s7  ;;  %p2459_p6 = por %p62_p4, %p61_p2 }
  0x35   : > { %p2465_p10 = por %p3340_p8, %p61_p2  ;;  %s47_s10 = ssub.s32 %s2323_s22, %s3362_s7 }
  0x36   : > { %p2026_p11 = scmp.lt.s32.totalorder %s2327_s23, 2  ;;  %p52_p12 = scmp.eq.s32.totalorder %s47_s10, 0 }
  0x37   : > { %s2473_s30 = sand.u32 1, %s2315_s20   ;;  %s1757_s13 = sshll.u32 %s2323_s22, 13 }
  0x38   : > { %s1739_s11 = sshll.u32 %s2473_s30, 9  ;;  %s3343_s0 = sld [smem:[#allocation17_spill]] }
  0x39   : > { %s2477_s12 = scalar_select %p52_p12, %s2315_s20, %s54_s8  }
  0x3a   : > { %s231_s29 = scalar_lea.vmem [#allocation3], %s1739_s11  ;;  %p2489_p13 = pnand %p2026_p11, %p2459_p6 }
  0x3b   : > { %3342 = sst [smem:[#allocation16_spill]] %s2477_s12  ;;  %s243_s16 = sshll.u32 %s231_s29, 4  ;;  %s2485_s16 = int_to_ptr.vmem [resolvable:$true] %s243_s16 }
  0x3c   : > { %s228_s17 = scalar_lea.sflag [#allocation4], %s2473_s30  ;;  %p2179_p3 = pneg %p2489_p13 }
  0x3e   : > { %s2483_s25 = scalar_lea.hbm %s3343_s0, %s1757_s13  ;;  %s2182_s9 = scalar_lea.hbm %s3343_s0, 16384 }
  0x3f   : > { %s2177_s14 = scalar_lea.hbm %s2483_s25, 8192  ;;  %p2183_p9 = scmp.lt.u32.totalorder %s2483_s25, %s3343_s0 }
  0x40   : > { %p2178_p0 = scmp.ne.s32.totalorder %s2483_s25, %s2177_s14  ;;  %p2184_p1 = scmp.lt.u32.totalorder %s2182_s9, %s2177_s14 }
  0x41   : > { %p2186_p4 = scmp.lt.u32.totalorder %s2177_s14, %s2483_s25 }
  0x42   : > { %p2180_p5 = pnand %p2179_p3, %p2178_p0  ;;  %p2185_p2 = por %p2184_p1, %p2183_p9 }
  0x44   : > { %p2181_p7 = pneg %p2180_p5  ;;  %p2187_p6 = por %p2186_p4, %p2185_p2 }
  0x46   : > { %p2188_p8 = pnand %p2187_p6, %p2181_p7 }
  0x48   : > { %2191 = shalt.err (!%p2188_p8)
}
  0x49   : > { %s2192_s8 = scalar_lea.vmem %s2485_s16, 8192  ;;  %s2332_s11 = smov [#allocation3]  }
  0x4a   : > { %p2193_p11 = scmp.ne.s32.totalorder %s2485_s16, %s2192_s8  ;;  %s2197_s13 = sshll.u32 %s2332_s11, 4  ;;  %s2198_s13 = int_to_ptr.vmem [resolvable:$false] %s2197_s13 }
  0x4b   : > { %s2199_s15 = scalar_lea.vmem %s2198_s13, 16384  ;;  %p2200_p5 = scmp.lt.s32.totalorder %s2485_s16, %s2198_s13 }
  0x4c   : > { %p2195_p12 = pnand %p2193_p11, %p2179_p3  ;;  %p2201_p9 = scmp.lt.s32.totalorder %s2199_s15, %s2192_s8 }
  0x4e   : > { %p2196_p0 = pneg %p2195_p12  ;;  %p2202_p1 = por %p2201_p9, %p2200_p5 }
  0x50   : > { %p2203_p2 = pnand %p2202_p1, %p2196_p0 }
  0x52   : > { %2206 = shalt.err (!%p2203_p2)
}
  0x53   : > { %s2333_s14 = smov 256   ;;  %s2334_s9 = smov 16  }
  0x54   : > { %2017 = dma.hbm_to_vmem [thread:$0]  (!%p2489_p13), %s2483_s25, 8192, %s2485_s16, %s228_s17, %s2333_s14, %s2333_s14, %s2334_s9  }
  0x55   : > { %s1742_s29 = sshll.u32 %s2473_s30, 8  ;;  %s1758_s11 = sshll.u32 %s2323_s22, 12 }
  0x56   : > { %s2527_s15 = scalar_lea.hbm %s3318_s1, %s1758_s11  ;;  %s257_s0 = scalar_lea.vmem [#allocation6], %s1742_s29 }
  0x57   : > { %s264_s2 = sshll.u32 %s257_s0, 4  ;;  %s3345_s7 = sand.u32 1, %s2327_s23   ;;  %s2529_s2 = int_to_ptr.vmem [resolvable:$true] %s264_s2 }
  0x58   : > { %s2533_s12 = scalar_lea.sflag [#allocation7], %s3345_s7  ;;  %s2207_s20 = scalar_lea.hbm %s2527_s15, 4096 }
  0x59   : > { %p2208_p7 = scmp.ne.s32.totalorder %s2527_s15, %s2207_s20  ;;  %s2212_s30 = scalar_lea.hbm %s3318_s1, 8192 }
  0x5a   : > { %p2213_p8 = scmp.lt.u32.totalorder %s2527_s15, %s3318_s1  ;;  %p2214_p11 = scmp.lt.u32.totalorder %s2212_s30, %s2207_s20 }
  0x5b   : > { %p2210_p4 = pnand %p2208_p7, %p2179_p3  ;;  %p2216_p0 = scmp.lt.u32.totalorder %s2207_s20, %s2527_s15 }
  0x5c   : > { %p2215_p12 = por %p2214_p11, %p2213_p8 }
  0x5d   : > { %p2211_p6 = pneg %p2210_p4 }
  0x5e   : > { %p2217_p5 = por %p2216_p0, %p2215_p12 }
  0x60   : > { %p2218_p9 = pnand %p2217_p5, %p2211_p6 }
  0x62   : > { %2221 = shalt.err (!%p2218_p9)
}
  0x63   : > { %s2222_s0 = scalar_lea.vmem %s2529_s2, 4096  ;;  %s2335_s7 = smov [#allocation6]  }
  0x64   : > { %p2223_p1 = scmp.ne.s32.totalorder %s2529_s2, %s2222_s0  ;;  %s2227_s9 = sshll.u32 %s2335_s7, 4  ;;  %s2228_s9 = int_to_ptr.vmem [resolvable:$false] %s2227_s9 }
  0x65   : > { %s2229_s29 = scalar_lea.vmem %s2228_s9, 8192  ;;  %p2230_p4 = scmp.lt.s32.totalorder %s2529_s2, %s2228_s9 }
  0x66   : > { %p2225_p2 = pnand %p2223_p1, %p2179_p3  ;;  %p2231_p8 = scmp.lt.s32.totalorder %s2229_s29, %s2222_s0 }
  0x68   : > { %p2226_p7 = pneg %p2225_p2  ;;  %p2232_p11 = por %p2231_p8, %p2230_p4 }
  0x6a   : > { %p2233_p12 = pnand %p2232_p11, %p2226_p7 }
  0x6c   : > { %2236 = shalt.err (!%p2233_p12)
}
  0x6d   : > { %s3346_s20 = smov 8   ;;  %s3347_s11 = smov 128  }
  0x6e   : > { %2020 = dma.hbm_to_vmem [thread:$0]  (!%p2489_p13), %s2527_s15, 4096, %s2529_s2, %s2533_s12, %s3347_s11, %s3347_s11, %s3346_s20  }
  0x6f   : > { %p3348_p3 = scmp.ne.s32.totalorder %s3335_s28, 0 }
  0x70   : > { %s2565_s13 = sand.u32 (!%p3348_p3), 1, %s2311_s19   ;;  %p3349_p6 = scmp.ne.s32.totalorder (!%p3348_p3), %s3333_s26, 0 }
  0x71   : > { %276 = sbr.rel (%p3348_p3) target bundleno = 1054 (0x41e), region = 40  ;;  %s1746_s8 = sshll.u32 (!%p3348_p3), %s2565_s13, 9 }
  0x72   : > { %s279_s16 = scalar_lea.sflag (!%p3348_p3), [#allocation4], %s2565_s13  ;;  %s2569_s17 = scalar_lea.vmem (!%p3348_p3), [#allocation3], %s1746_s8 }
  0x78   : > { %2290 = dma.done.wait (%p3349_p6), %s279_s16, 8192  }
  0x79   : > { %2292 = vsyncadd (%p3349_p6), %s279_s16, 4294959104  ;;  %s287_s2 = sand.u32 1, %s2401_s24   ;;  %s1747_s28 = sshll.u32 %s2565_s13, 8 }
  0x7a   : > { %s288_s12 = scalar_lea.sflag [#allocation7], %s287_s2  ;;  %s2579_s10 = scalar_lea.vmem [#allocation6], %s1747_s28 }
  0x7b   : > { %2294 = dma.done.wait (%p3349_p6), %s288_s12, 4096  }
  0x7c   : > { %2296 = vsyncadd (%p3349_p6), %s288_s12, 4294963200  ;;  %p3350_p13 = scmp.eq.s32.totalorder %s2401_s24, 0 }
  0x7e   : > { %2298 = dma.done.wait (%p3350_p13), [#allocation7], 2048   ;;  %p3351_p0 = pmov %p3350_p13 }
  0x7f   : > { %v2336_v0 = vmov 0.0|0.0   ;;  %v2592_v1 = vld [vmem:[%s2579_s10] sm:$0xff]  ;;  %v2595_v2 = vld [vmem:[%s2579_s10 + $0x8] sm:$0xff]  ;;  %v2598_v3 = vld [vmem:[%s2579_s10 + $0x10] sm:$0xff]  ;;  %s3135_s25 = scalar_lea.vmem [#allocation9], %s1747_s28  ;;  %s1759_s14 = sshll.u32 %s2319_s21, 12 }
  0x80   : > { %2300 = vsyncadd (%p3351_p0), [#allocation7], 4294965248  ;;  %1888 = vmatprep.subr.bf16.mxu0 %v2336_v0  ;;  %1968 = vmatprep.subr.bf16.mxu1 %v2336_v0  ;;  %v1889_v4 = vpack.c.bf16 %v2595_v2, %v2592_v1  ;;  %v2603_v5 = vld [vmem:[%s2579_s10 + $0x18] sm:$0xff]  ;;  %v2609_v7 = vld [vmem:[%s2579_s10 + $0x20] sm:$0xff]  ;;  %s1606_s0 = sshll.u32 %s3135_s25, 4  ;;  %s3263_s29 = scalar_lea.hbm %s3322_s5, %s1759_s14  ;;  %s3265_s0 = int_to_ptr.vmem [resolvable:$true] %s1606_s0 }
  0x81   : > { %v1892_v6 = vpack.c.bf16 %v2603_v5, %v2598_v3  ;;  %v2612_v8 = vld [vmem:[%s2579_s10 + $0x28] sm:$0xff]  ;;  %v2619_v10 = vld [vmem:[%s2579_s10 + $0x30] sm:$0xff]  ;;  %v2622_v11 = vld [vmem:[%s2579_s10 + $0x38] sm:$0xff]  ;;  %s1591_s21 = scalar_lea.sflag [#allocation5], %s2565_s13  ;;  %s2237_s20 = scalar_lea.vmem %s3265_s0, 4096 }
  0x82   : > { %1890 = vmatpush1.bf16.msra.mxu0 %v1889_v4  ;;  %1984 = vmatpush1.bf16.msra.mxu1 %v1889_v4  ;;  %v1895_v9 = vpack.c.bf16 %v2612_v8, %v2609_v7  ;;  %v433_v12 = vld [vmem:[%s2569_s17 + $0x8] sm:$0xff]  ;;  %v1898_v13 = vpack.c.bf16 %v2622_v11, %v2619_v10  ;;  %v2630_v14 = vld [vmem:[%s2579_s10 + $0x40] sm:$0xff]  ;;  %v2640_v17 = vld [vmem:[%s2579_s10 + $0x50] sm:$0xff]  ;;  %p2238_p5 = scmp.ne.s32.totalorder %s3265_s0, %s2237_s20  ;;  %s2337_s11 = smov [#allocation9]  }
  0x83   : > { %1891 = vmatprep.subr.bf16.mxu0 %v2336_v0  ;;  %1969 = vmatprep.subr.bf16.mxu1 %v2336_v0  ;;  %v2633_v15 = vld [vmem:[%s2579_s10 + $0x48] sm:$0xff]  ;;  %v2643_v18 = vld [vmem:[%s2579_s10 + $0x58] sm:$0xff]  ;;  %v2650_v20 = vld [vmem:[%s2579_s10 + $0x60] sm:$0xff]  ;;  %s2241_s8 = sshll.u32 %s2337_s11, 4  ;;  %s2242_s8 = int_to_ptr.vmem [resolvable:$false] %s2241_s8 }
  0x84   : > { %560 = vmatprep.mubr.f32.mxu0 %v433_v12  ;;  %v1901_v16 = vpack.c.bf16 %v2633_v15, %v2630_v14  ;;  %v1904_v19 = vpack.c.bf16 %v2643_v18, %v2640_v17  ;;  %v2653_v21 = vld [vmem:[%s2579_s10 + $0x68] sm:$0xff]  ;;  %v2660_v23 = vld [vmem:[%s2579_s10 + $0x70] sm:$0xff]  ;;  %v2663_v24 = vld [vmem:[%s2579_s10 + $0x78] sm:$0xff]  ;;  %p2239_p9 = pnand %p2238_p5, %p2465_p10  ;;  %s2243_s16 = scalar_lea.vmem %s2242_s8, 8192 }
  0x85   : > { %v1907_v22 = vpack.c.bf16 %v2653_v21, %v2650_v20  ;;  %v481_v25 = vld [vmem:[%s2569_s17 + $0x188] sm:$0xff]  ;;  %v1910_v26 = vpack.c.bf16 %v2663_v24, %v2660_v23  ;;  %v2671_v27 = vld [vmem:[%s2579_s10 + $0x80] sm:$0xff]  ;;  %v2681_v30 = vld [vmem:[%s2579_s10 + $0x90] sm:$0xff]  ;;  %p2244_p2 = scmp.lt.s32.totalorder %s3265_s0, %s2242_s8  ;;  %p2245_p7 = scmp.lt.s32.totalorder %s2243_s16, %s2237_s20 }
  0x86   : > { %1893 = vmatpush1.bf16.msra.mxu0 %v1892_v6  ;;  %1985 = vmatpush1.bf16.msra.mxu1 %v1892_v6  ;;  %v2674_v28 = vld [vmem:[%s2579_s10 + $0x88] sm:$0xff]  ;;  %v2684_v31 = vld [vmem:[%s2579_s10 + $0x98] sm:$0xff]  ;;  %v2691_v33 = vld [vmem:[%s2579_s10 + $0xa0] sm:$0xff]  ;;  %p2240_p1 = pneg %p2239_p9 }
  0x87   : > { %1894 = vmatprep.subr.bf16.mxu0 %v2336_v0  ;;  %1970 = vmatprep.subr.bf16.mxu1 %v2336_v0  ;;  %v1913_v29 = vpack.c.bf16 %v2674_v28, %v2671_v27  ;;  %v1916_v32 = vpack.c.bf16 %v2684_v31, %v2681_v30  ;;  %v2694_v34 = vld [vmem:[%s2579_s10 + $0xa8] sm:$0xff]  ;;  %v2701_v36 = vld [vmem:[%s2579_s10 + $0xb0] sm:$0xff]  ;;  %v2704_v37 = vld [vmem:[%s2579_s10 + $0xb8] sm:$0xff]  ;;  %p2246_p4 = por %p2245_p7, %p2244_p2 }
  0x88   : > { %680 = vmatprep.mubr.f32.mxu1 %v481_v25  ;;  %v1919_v35 = vpack.c.bf16 %v2694_v34, %v2691_v33  ;;  %v1922_v38 = vpack.c.bf16 %v2704_v37, %v2701_v36  ;;  %v2711_v39 = vld [vmem:[%s2579_s10 + $0xc0] sm:$0xff]  ;;  %v2714_v40 = vld [vmem:[%s2579_s10 + $0xc8] sm:$0xff]  ;;  %v2721_v42 = vld [vmem:[%s2579_s10 + $0xd0] sm:$0xff] }
  0x89   : > { %v1925_v41 = vpack.c.bf16 %v2714_v40, %v2711_v39  ;;  %v2724_v43 = vld [vmem:[%s2579_s10 + $0xd8] sm:$0xff]  ;;  %v2731_v45 = vld [vmem:[%s2579_s10 + $0xe0] sm:$0xff]  ;;  %v2734_v46 = vld [vmem:[%s2579_s10 + $0xe8] sm:$0xff]  ;;  %p2247_p8 = pnand %p2246_p4, %p2240_p1 }
  0x8a   : > { %1896 = vmatpush1.bf16.msra.mxu0 %v1895_v9  ;;  %1986 = vmatpush1.bf16.msra.mxu1 %v1895_v9  ;;  %v1928_v44 = vpack.c.bf16 %v2724_v43, %v2721_v42  ;;  %v1931_v47 = vpack.c.bf16 %v2734_v46, %v2731_v45  ;;  %v2741_v48 = vld [vmem:[%s2579_s10 + $0xf0] sm:$0xff]  ;;  %v2744_v49 = vld [vmem:[%s2579_s10 + $0xf8] sm:$0xff]  ;;  %v820_v50 = vld [vmem:[#allocation8] sm:$0xff] }
  0x8b   : > { %1897 = vmatprep.subr.bf16.mxu0 %v2336_v0  ;;  %1971 = vmatprep.subr.bf16.mxu1 %v2336_v0  ;;  %v821_v51 = vld [vmem:[#allocation8 + $0x8] sm:$0xff]  ;;  %v1934_v52 = vpack.c.bf16 %v2744_v49, %v2741_v48  ;;  %v822_v54 = vld [vmem:[#allocation8 + $0x10] sm:$0xff]  ;;  %v823_v55 = vld [vmem:[#allocation8 + $0x18] sm:$0xff] }
  0x8c   : > { %v1936_v53 = vpack.c.bf16 %v821_v51, %v820_v50  ;;  %v432_v56 = vld [vmem:[%s2569_s17] sm:$0xff]  ;;  %v435_v57 = vld [vmem:[%s2569_s17 + $0x18] sm:$0xff]  ;;  %v1940_v60 = vpack.c.bf16 %v823_v55, %v822_v54  ;;  %v825_v62 = vld [vmem:[#allocation8 + $0x28] sm:$0xff] }
  0x8d   : > { %v480_v58 = vld [vmem:[%s2569_s17 + $0x180] sm:$0xff]  ;;  %v483_v59 = vld [vmem:[%s2569_s17 + $0x198] sm:$0xff]  ;;  %v434_v63 = vld [vmem:[%s2569_s17 + $0x10] sm:$0xff] }
  0x8e   : > { %1899 = vmatpush1.bf16.msra.mxu0 %v1898_v13  ;;  %1987 = vmatpush1.bf16.msra.mxu1 %v1898_v13  ;;  %v824_v61 = vld [vmem:[#allocation8 + $0x20] sm:$0xff]  ;;  %v482_v4 = vld [vmem:[%s2569_s17 + $0x190] sm:$0xff]  ;;  %v485_v6 = vld [vmem:[%s2569_s17 + $0x1a8] sm:$0xff] }
  0x8f   : > { %1900 = vmatprep.subr.bf16.mxu0 %v2336_v0  ;;  %1972 = vmatprep.subr.bf16.mxu1 %v2336_v0  ;;  %v1944_v9 = vpack.c.bf16 %v825_v62, %v824_v61  ;;  %v826_v12 = vld [vmem:[#allocation8 + $0x30] sm:$0xff]  ;;  %v827_v13 = vld [vmem:[#allocation8 + $0x38] sm:$0xff]  ;;  %v488_v54 = vld [vmem:[%s2569_s17 + $0x1c0] sm:$0xff] }
  0x90   : > { %v487_v25 = vld [vmem:[%s2569_s17 + $0x1b8] sm:$0xff]  ;;  %v830_v50 = vld [vmem:[#allocation8 + $0x50] sm:$0xff]  ;;  %v493_v62 = vld [vmem:[%s2569_s17 + $0x1e8] sm:$0xff] }
  0x91   : > { %v831_v51 = vld [vmem:[#allocation8 + $0x58] sm:$0xff]  ;;  %v490_v61 = vld [vmem:[%s2569_s17 + $0x1d0] sm:$0xff] }
  0x92   : > { %1902 = vmatpush1.bf16.msra.mxu0 %v1901_v16  ;;  %1988 = vmatpush1.bf16.msra.mxu1 %v1901_v16  ;;  %v436_v16 = vld [vmem:[%s2569_s17 + $0x20] sm:$0xff]  ;;  %v491_v55 = vld [vmem:[%s2569_s17 + $0x1d8] sm:$0xff] }
  0x93   : > { %1903 = vmatprep.subr.bf16.mxu0 %v2336_v0  ;;  %1973 = vmatprep.subr.bf16.mxu1 %v2336_v0 }
  0x96   : > { %1905 = vmatpush1.bf16.msra.mxu0 %v1904_v19  ;;  %1989 = vmatpush1.bf16.msra.mxu1 %v1904_v19  ;;  %v439_v19 = vld [vmem:[%s2569_s17 + $0x38] sm:$0xff] }
  0x97   : > { %1906 = vmatprep.subr.bf16.mxu0 %v2336_v0  ;;  %1974 = vmatprep.subr.bf16.mxu1 %v2336_v0 }
  0x9a   : > { %1908 = vmatpush1.bf16.msra.mxu0 %v1907_v22  ;;  %1990 = vmatpush1.bf16.msra.mxu1 %v1907_v22  ;;  %v484_v22 = vld [vmem:[%s2569_s17 + $0x1a0] sm:$0xff] }
  0x9b   : > { %1909 = vmatprep.subr.bf16.mxu0 %v2336_v0  ;;  %1975 = vmatprep.subr.bf16.mxu1 %v2336_v0 }
  0x9e   : > { %1911 = vmatpush1.bf16.msra.mxu0 %v1910_v26  ;;  %1991 = vmatpush1.bf16.msra.mxu1 %v1910_v26  ;;  %v1948_v26 = vpack.c.bf16 %v827_v13, %v826_v12  ;;  %v446_v12 = vld [vmem:[%s2569_s17 + $0x70] sm:$0xff]  ;;  %v449_v13 = vld [vmem:[%s2569_s17 + $0x88] sm:$0xff] }
  0x9f   : > { %1912 = vmatprep.subr.bf16.mxu0 %v2336_v0  ;;  %1976 = vmatprep.subr.bf16.mxu1 %v2336_v0 }
  0xa2   : > { %1914 = vmatpush1.bf16.msra.mxu0 %v1913_v29  ;;  %1992 = vmatpush1.bf16.msra.mxu1 %v1913_v29  ;;  %v828_v29 = vld [vmem:[#allocation8 + $0x40] sm:$0xff] }
  0xa3   : > { %1915 = vmatprep.subr.bf16.mxu0 %v2336_v0  ;;  %1977 = vmatprep.subr.bf16.mxu1 %v2336_v0 }
  0xa6   : > { %1917 = vmatpush1.bf16.msra.mxu0 %v1916_v32  ;;  %1993 = vmatpush1.bf16.msra.mxu1 %v1916_v32  ;;  %v829_v32 = vld [vmem:[#allocation8 + $0x48] sm:$0xff] }
  0xa7   : > { %1918 = vmatprep.subr.bf16.mxu0 %v2336_v0  ;;  %1978 = vmatprep.subr.bf16.mxu1 %v2336_v0 }
  0xaa   : > { %1920 = vmatpush1.bf16.msra.mxu0 %v1919_v35  ;;  %1994 = vmatpush1.bf16.msra.mxu1 %v1919_v35  ;;  %v438_v35 = vld [vmem:[%s2569_s17 + $0x30] sm:$0xff] }
  0xab   : > { %1921 = vmatprep.subr.bf16.mxu0 %v2336_v0  ;;  %1979 = vmatprep.subr.bf16.mxu1 %v2336_v0 }
  0xae   : > { %1923 = vmatpush1.bf16.msra.mxu0 %v1922_v38  ;;  %1995 = vmatpush1.bf16.msra.mxu1 %v1922_v38  ;;  %v441_v38 = vld [vmem:[%s2569_s17 + $0x48] sm:$0xff] }
  0xaf   : > { %1924 = vmatprep.subr.bf16.mxu0 %v2336_v0  ;;  %1980 = vmatprep.subr.bf16.mxu1 %v2336_v0 }
  0xb2   : > { %1926 = vmatpush1.bf16.msra.mxu0 %v1925_v41  ;;  %1996 = vmatpush1.bf16.msra.mxu1 %v1925_v41  ;;  %v486_v41 = vld [vmem:[%s2569_s17 + $0x1b0] sm:$0xff] }
  0xb3   : > { %1927 = vmatprep.subr.bf16.mxu0 %v2336_v0  ;;  %1981 = vmatprep.subr.bf16.mxu1 %v2336_v0 }
  0xb6   : > { %1929 = vmatpush1.bf16.msra.mxu0 %v1928_v44  ;;  %1997 = vmatpush1.bf16.msra.mxu1 %v1928_v44  ;;  %v489_v44 = vld [vmem:[%s2569_s17 + $0x1c8] sm:$0xff] }
  0xb7   : > { %1930 = vmatprep.subr.bf16.mxu0 %v2336_v0  ;;  %1982 = vmatprep.subr.bf16.mxu1 %v2336_v0 }
  0xba   : > { %1932 = vmatpush1.bf16.msra.mxu0 %v1931_v47  ;;  %1998 = vmatpush1.bf16.msra.mxu1 %v1931_v47  ;;  %v1952_v47 = vpack.c.bf16 %v829_v32, %v828_v29  ;;  %v452_v29 = vld [vmem:[%s2569_s17 + $0xa0] sm:$0xff]  ;;  %v455_v32 = vld [vmem:[%s2569_s17 + $0xb8] sm:$0xff] }
  0xbb   : > { %1933 = vmatprep.subr.bf16.mxu0 %v2336_v0  ;;  %1983 = vmatprep.subr.bf16.mxu1 %v2336_v0  ;;  %v437_v0 = vld [vmem:[%s2569_s17 + $0x28] sm:$0xff] }
  0xbe   : > { %1935 = vmatpush1.bf16.msra.mxu0 %v1934_v52  ;;  %1999 = vmatpush1.bf16.msra.mxu1 %v1934_v52  ;;  %v440_v52 = vld [vmem:[%s2569_s17 + $0x40] sm:$0xff] }
  0xbf   : > { %1937 = vmatprep.subr.bf16.mxu1 %v1936_v53 }
  0xc1   : > { %561 = vmatmul.mubr.f32.vlgmr.msra.gmra.mrb[0].mxu0 %v432_v56  ;;  %681 = vmatmul.mubr.f32.vlgmr.msra.gmra.mrb[0].mxu1 %v480_v58  ;;  %v1956_v56 = vpack.c.bf16 %v831_v51, %v830_v50  ;;  %v833_v58 = vld [vmem:[#allocation8 + $0x68] sm:$0xff]  ;;  %v460_v51 = vld [vmem:[%s2569_s17 + $0xe0] sm:$0xff] }
  0xc2   : > { %565 = vmatprep.mubr.f32.mxu0 %v435_v57  ;;  %685 = vmatprep.mubr.f32.mxu1 %v483_v59  ;;  %v832_v57 = vld [vmem:[#allocation8 + $0x60] sm:$0xff]  ;;  %v442_v59 = vld [vmem:[%s2569_s17 + $0x50] sm:$0xff]  ;;  %v461_v50 = vld [vmem:[%s2569_s17 + $0xe8] sm:$0xff] }
  0xc3   : > { %1939 = vmatpush3.bf16.msra.mxu1 %v1936_v53  ;;  %v443_v53 = vld [vmem:[%s2569_s17 + $0x58] sm:$0xff] }
  0xc4   : > { %1941 = vmatprep.subr.bf16.mxu1 %v1940_v60 }
  0xc5   : > { %566 = vmatmul.mubr.f32.gmra.mrb[2].mxu0 %v434_v63  ;;  %686 = vmatmul.mubr.f32.gmra.mrb[2].mxu1 %v482_v4  ;;  %v1960_v63 = vpack.c.bf16 %v833_v58, %v832_v57  ;;  %v447_v4 = vld [vmem:[%s2569_s17 + $0x78] sm:$0xff]  ;;  %v466_v57 = vld [vmem:[%s2569_s17 + $0x110] sm:$0xff]  ;;  %v469_v58 = vld [vmem:[%s2569_s17 + $0x128] sm:$0xff] }
  0xc6   : > { %570 = vmatprep.mubr.f32.mxu0 %v437_v0  ;;  %690 = vmatprep.mubr.f32.mxu1 %v485_v6  ;;  %v444_v0 = vld [vmem:[%s2569_s17 + $0x60] sm:$0xff] }
  0xc7   : > { %1943 = vmatpush3.bf16.msra.mxu1 %v1940_v60  ;;  %v445_v60 = vld [vmem:[%s2569_s17 + $0x68] sm:$0xff]  ;;  %v492_v6 = vld [vmem:[%s2569_s17 + $0x1e0] sm:$0xff] }
  0xc8   : > { %1945 = vmatprep.subr.bf16.mxu1 %v1944_v9 }
  0xc9   : > { %571 = vmatmul.mubr.f32.gmra.mrb[4].mxu0 %v436_v16  ;;  %691 = vmatmul.mubr.f32.gmra.mrb[4].mxu1 %v484_v22  ;;  %v494_v16 = vld [vmem:[%s2569_s17 + $0x1f0] sm:$0xff]  ;;  %v451_v22 = vld [vmem:[%s2569_s17 + $0x98] sm:$0xff] }
  0xca   : > { %575 = vmatprep.mubr.f32.mxu0 %v439_v19  ;;  %695 = vmatprep.mubr.f32.mxu1 %v487_v25  ;;  %v448_v19 = vld [vmem:[%s2569_s17 + $0x80] sm:$0xff]  ;;  %v450_v25 = vld [vmem:[%s2569_s17 + $0x90] sm:$0xff] }
  0xcb   : > { %1947 = vmatpush3.bf16.msra.mxu1 %v1944_v9  ;;  %v495_v9 = vld [vmem:[%s2569_s17 + $0x1f8] sm:$0xff] }
  0xcc   : > { %1949 = vmatprep.subr.bf16.mxu1 %v1948_v26 }
  0xcd   : > { %576 = vmatmul.mubr.f32.gmra.mrb[6].mxu0 %v438_v35  ;;  %696 = vmatmul.mubr.f32.gmra.mrb[6].mxu1 %v486_v41  ;;  %v454_v35 = vld [vmem:[%s2569_s17 + $0xb0] sm:$0xff]  ;;  %v456_v41 = vld [vmem:[%s2569_s17 + $0xc0] sm:$0xff] }
  0xce   : > { %580 = vmatprep.mubr.f32.mxu0 %v441_v38  ;;  %700 = vmatprep.mubr.f32.mxu1 %v489_v44  ;;  %v457_v38 = vld [vmem:[%s2569_s17 + $0xc8] sm:$0xff]  ;;  %v459_v44 = vld [vmem:[%s2569_s17 + $0xd8] sm:$0xff] }
  0xcf   : > { %1951 = vmatpush3.bf16.msra.mxu1 %v1948_v26  ;;  %v453_v26 = vld [vmem:[%s2569_s17 + $0xa8] sm:$0xff] }
  0xd0   : > { %1953 = vmatprep.subr.bf16.mxu1 %v1952_v47 }
  0xd1   : > { %581 = vmatmul.mubr.f32.gmra.mrb[8].mxu0 %v440_v52  ;;  %701 = vmatmul.mubr.f32.gmra.mrb[8].mxu1 %v488_v54  ;;  %v463_v52 = vld [vmem:[%s2569_s17 + $0xf8] sm:$0xff]  ;;  %v465_v54 = vld [vmem:[%s2569_s17 + $0x108] sm:$0xff] }
  0xd2   : > { %585 = vmatprep.mubr.f32.mxu0 %v443_v53  ;;  %705 = vmatprep.mubr.f32.mxu1 %v491_v55  ;;  %v462_v53 = vld [vmem:[%s2569_s17 + $0xf0] sm:$0xff]  ;;  %v464_v55 = vld [vmem:[%s2569_s17 + $0x100] sm:$0xff] }
  0xd3   : > { %1955 = vmatpush3.bf16.msra.mxu1 %v1952_v47  ;;  %v458_v47 = vld [vmem:[%s2569_s17 + $0xd0] sm:$0xff] }
  0xd4   : > { %1957 = vmatprep.subr.bf16.mxu1 %v1956_v56 }
  0xd5   : > { %586 = vmatmul.mubr.f32.gmra.mrb[10].mxu0 %v442_v59  ;;  %706 = vmatmul.mubr.f32.gmra.mrb[10].mxu1 %v490_v61  ;;  %v468_v59 = vld [vmem:[%s2569_s17 + $0x120] sm:$0xff]  ;;  %v470_v61 = vld [vmem:[%s2569_s17 + $0x130] sm:$0xff] }
  0xd6   : > { %590 = vmatprep.mubr.f32.mxu0 %v445_v60  ;;  %710 = vmatprep.mubr.f32.mxu1 %v493_v62  ;;  %v471_v60 = vld [vmem:[%s2569_s17 + $0x138] sm:$0xff]  ;;  %v473_v62 = vld [vmem:[%s2569_s17 + $0x148] sm:$0xff] }
  0xd7   : > { %1959 = vmatpush3.bf16.msra.mxu1 %v1956_v56  ;;  %v467_v56 = vld [vmem:[%s2569_s17 + $0x118] sm:$0xff] }
  0xd8   : > { %1961 = vmatprep.subr.bf16.mxu1 %v1960_v63 }
  0xd9   : > { %591 = vmatmul.mubr.f32.gmra.mrb[12].mxu0 %v444_v0  ;;  %711 = vmatmul.mubr.f32.gmra.mrb[12].mxu1 %v492_v6  ;;  %v475_v0 = vld [vmem:[%s2569_s17 + $0x158] sm:$0xff]  ;;  %v834_v6 = vld [vmem:[#allocation8 + $0x70] sm:$0xff] }
  0xda   : > { %595 = vmatprep.mubr.f32.mxu0 %v447_v4  ;;  %715 = vmatprep.mubr.f32.mxu1 %v495_v9  ;;  %v474_v4 = vld [vmem:[%s2569_s17 + $0x150] sm:$0xff]  ;;  %v835_v9 = vld [vmem:[#allocation8 + $0x78] sm:$0xff] }
  0xdb   : > { %1963 = vmatpush3.bf16.msra.mxu1 %v1960_v63  ;;  %v472_v63 = vld [vmem:[%s2569_s17 + $0x140] sm:$0xff] }
  0xdd   : > { %596 = vmatmul.mubr.f32.gmra.mrb[14].mxu0 %v446_v12  ;;  %716 = vmatmul.mubr.f32.gmra.mrb[14].mxu1 %v494_v16  ;;  %v477_v12 = vld [vmem:[%s2569_s17 + $0x168] sm:$0xff]  ;;  %v476_v16 = vld [vmem:[%s2569_s17 + $0x160] sm:$0xff] }
  0xde   : > { %600 = vmatprep.mubr.f32.mxu0 %v449_v13  ;;  %v1964_v13 = vpack.c.bf16 %v835_v9, %v834_v6 }
  0xe0   : > { %1965 = vmatprep.subr.bf16.mxu1 %v1964_v13 }
  0xe1   : > { %601 = vmatmul.mubr.f32.gmra.mrb[16].mxu0 %v448_v19  ;;  %1967 = vmatpush3.bf16.msra.mxu1 %v1964_v13  ;;  %v479_v19 = vld [vmem:[%s2569_s17 + $0x178] sm:$0xff] }
  0xe2   : > { %605 = vmatprep.mubr.f32.mxu0 %v451_v22  ;;  %v478_v22 = vld [vmem:[%s2569_s17 + $0x170] sm:$0xff] }
  0xe5   : > { %606 = vmatmul.mubr.f32.gmra.mrb[18].mxu0 %v450_v25 }
  0xe6   : > { %610 = vmatprep.mubr.f32.mxu0 %v453_v26 }
  0xe9   : > { %611 = vmatmul.mubr.f32.gmra.mrb[20].mxu0 %v452_v29 }
  0xea   : > { %615 = vmatprep.mubr.f32.mxu0 %v455_v32 }
  0xed   : > { %616 = vmatmul.mubr.f32.gmra.mrb[22].mxu0 %v454_v35 }
  0xee   : > { %620 = vmatprep.mubr.f32.mxu0 %v457_v38 }
  0xf1   : > { %621 = vmatmul.mubr.f32.gmra.mrb[24].mxu0 %v456_v41 }
  0xf2   : > { %625 = vmatprep.mubr.f32.mxu0 %v459_v44 }
  0xf5   : > { %626 = vmatmul.mubr.f32.gmra.mrb[26].mxu0 %v458_v47 }
  0xf6   : > { %630 = vmatprep.mubr.f32.mxu0 %v461_v50 }
  0xf9   : > { %631 = vmatmul.mubr.f32.gmra.mrb[28].mxu0 %v460_v51 }
  0xfa   : > { %635 = vmatprep.mubr.f32.mxu0 %v463_v52 }
  0xfd   : > { %636 = vmatmul.mubr.f32.gmra.mrb[30].mxu0 %v462_v53 }
  0xfe   : > { %640 = vmatprep.mubr.f32.mxu0 %v465_v54 }
 0x101   : > { %641 = vmatmul.mubr.f32.gmra.mrb[32].mxu0 %v464_v55 }
 0x102   : > { %645 = vmatprep.mubr.f32.mxu0 %v467_v56 }
 0x105   : > { %646 = vmatmul.mubr.f32.gmra.mrb[34].mxu0 %v466_v57 }
 0x106   : > { %650 = vmatprep.mubr.f32.mxu0 %v469_v58 }
 0x109   : > { %651 = vmatmul.mubr.f32.gmra.mrb[36].mxu0 %v468_v59 }
 0x10a   : > { %655 = vmatprep.mubr.f32.mxu0 %v471_v60 }
 0x10d   : > { %656 = vmatmul.mubr.f32.gmra.mrb[38].mxu0 %v470_v61 }
 0x10e   : > { %660 = vmatprep.mubr.f32.mxu0 %v473_v62 }
 0x111   : > { %661 = vmatmul.mubr.f32.gmra.mrb[40].mxu0 %v472_v63 }
 0x112   : > { %665 = vmatprep.mubr.f32.mxu0 %v475_v0 }
 0x115   : > { %666 = vmatmul.mubr.f32.gmra.mrb[42].mxu0 %v474_v4 }
 0x116   : > { %670 = vmatprep.mubr.f32.mxu0 %v477_v12 }
 0x119   : > { %671 = vmatmul.mubr.f32.gmra.mrb[44].mxu0 %v476_v16 }
 0x11a   : > { %675 = vmatprep.mubr.f32.mxu0 %v479_v19 }
 0x11d   : > { %676 = vmatmul.mubr.f32.gmra.mrb[46].mxu0 %v478_v22 }
 0x194   : > { %v562_v25 = vpop.f32.mrb[0].mxu0  ;;  %v2813_v29 = vpop.f32.mrb[0].mxu1 }
 0x195   : > { %v564_v26 = vpop.f32.mrb[1].mxu0  ;;  %1840 = vmatprep.mubr.f32.mxu1 %v562_v25  ;;  %v684_v32 = vpop.f32.mrb[1].mxu1 }
 0x198   : > { %v567_v35 = vpop.f32.mrb[2].mxu0  ;;  %v2815_v41 = vpop.f32.mrb[2].mxu1 }
 0x199   : > { %v569_v38 = vpop.f32.mrb[3].mxu0  ;;  %1841 = vmatmul.mubr.f32.vlgmr.msra.gmra.mrb[16].mxu1 %v567_v35  ;;  %v689_v44 = vpop.f32.mrb[3].mxu1 }
 0x19c   : > { %v572_v47 = vpop.f32.mrb[4].mxu0  ;;  %v2817_v51 = vpop.f32.mrb[4].mxu1 }
 0x19d   : > { %v574_v50 = vpop.f32.mrb[5].mxu0  ;;  %1843 = vmatprep.mubr.f32.mxu1 %v572_v47  ;;  %v694_v52 = vpop.f32.mrb[5].mxu1 }
 0x1a0   : > { %v577_v53 = vpop.f32.mrb[6].mxu0  ;;  %v2819_v55 = vpop.f32.mrb[6].mxu1 }
 0x1a1   : > { %v579_v54 = vpop.f32.mrb[7].mxu0  ;;  %1844 = vmatmul.mubr.f32.gmra.mrb[18].mxu1 %v577_v53  ;;  %v699_v56 = vpop.f32.mrb[7].mxu1 }
 0x1a4   : > { %v582_v57 = vpop.f32.mrb[8].mxu0  ;;  %v2821_v59 = vpop.f32.mrb[8].mxu1 }
 0x1a5   : > { %v584_v58 = vpop.f32.mrb[9].mxu0  ;;  %1846 = vmatprep.mubr.f32.mxu1 %v582_v57  ;;  %v704_v60 = vpop.f32.mrb[9].mxu1 }
 0x1a8   : > { %v587_v61 = vpop.f32.mrb[10].mxu0  ;;  %v2823_v63 = vpop.f32.mrb[10].mxu1 }
 0x1a9   : > { %v589_v62 = vpop.f32.mrb[11].mxu0  ;;  %1847 = vmatmul.mubr.f32.gmra.mrb[20].mxu1 %v587_v61  ;;  %v709_v0 = vpop.f32.mrb[11].mxu1 }
 0x1ac   : > { %v592_v4 = vpop.f32.mrb[12].mxu0  ;;  %v712_v9 = vpop.f32.mrb[12].mxu1 }
 0x1ad   : > { %v594_v6 = vpop.f32.mrb[13].mxu0  ;;  %1849 = vmatprep.mubr.f32.mxu1 %v592_v4  ;;  %v714_v12 = vpop.f32.mrb[13].mxu1 }
 0x1b0   : > { %v597_v13 = vpop.f32.mrb[14].mxu0  ;;  %v717_v19 = vpop.f32.mrb[14].mxu1 }
 0x1b1   : > { %v599_v16 = vpop.f32.mrb[15].mxu0  ;;  %1850 = vmatmul.mubr.f32.gmra.mrb[22].mxu1 %v597_v13  ;;  %v719_v22 = vpop.f32.mrb[15].mxu1 }
 0x1b4   : > { %v602_v25 = vpop.f32.mrb[16].mxu0 }
 0x1b5   : > { %v604_v26 = vpop.f32.mrb[17].mxu0  ;;  %1852 = vmatprep.mubr.f32.mxu1 %v602_v25 }
 0x1b8   : > { %v607_v32 = vpop.f32.mrb[18].mxu0 }
 0x1b9   : > { %v609_v35 = vpop.f32.mrb[19].mxu0  ;;  %1853 = vmatmul.mubr.f32.gmra.mrb[24].mxu1 %v607_v32 }
 0x1bc   : > { %v612_v38 = vpop.f32.mrb[20].mxu0 }
 0x1bd   : > { %v614_v44 = vpop.f32.mrb[21].mxu0  ;;  %1855 = vmatprep.mubr.f32.mxu1 %v612_v38 }
 0x1c0   : > { %v617_v47 = vpop.f32.mrb[22].mxu0 }
 0x1c1   : > { %v619_v50 = vpop.f32.mrb[23].mxu0  ;;  %1856 = vmatmul.mubr.f32.gmra.mrb[26].mxu1 %v617_v47 }
 0x1c4   : > { %v622_v52 = vpop.f32.mrb[24].mxu0 }
 0x1c5   : > { %v624_v53 = vpop.f32.mrb[25].mxu0  ;;  %1858 = vmatprep.mubr.f32.mxu1 %v622_v52 }
 0x1c8   : > { %v627_v54 = vpop.f32.mrb[26].mxu0 }
 0x1c9   : > { %v629_v56 = vpop.f32.mrb[27].mxu0  ;;  %1859 = vmatmul.mubr.f32.gmra.mrb[28].mxu1 %v627_v54 }
 0x1cc   : > { %v632_v57 = vpop.f32.mrb[28].mxu0 }
 0x1cd   : > { %v634_v58 = vpop.f32.mrb[29].mxu0  ;;  %1861 = vmatprep.mubr.f32.mxu1 %v632_v57 }
 0x1d0   : > { %v637_v60 = vpop.f32.mrb[30].mxu0 }
 0x1d1   : > { %v639_v61 = vpop.f32.mrb[31].mxu0  ;;  %1862 = vmatmul.mubr.f32.gmra.mrb[30].mxu1 %v637_v60 }
 0x1d4   : > { %v642_v62 = vpop.f32.mrb[32].mxu0 }
 0x1d5   : > { %v644_v0 = vpop.f32.mrb[33].mxu0  ;;  %1864 = vmatprep.mubr.f32.mxu1 %v642_v62 }
 0x1d8   : > { %v647_v4 = vpop.f32.mrb[34].mxu0 }
 0x1d9   : > { %v649_v6 = vpop.f32.mrb[35].mxu0  ;;  %1865 = vmatmul.mubr.f32.gmra.mrb[32].mxu1 %v647_v4 }
 0x1dc   : > { %v652_v12 = vpop.f32.mrb[36].mxu0 }
 0x1dd   : > { %v654_v13 = vpop.f32.mrb[37].mxu0  ;;  %1867 = vmatprep.mubr.f32.mxu1 %v652_v12 }
 0x1e0   : > { %v657_v16 = vpop.f32.mrb[38].mxu0 }
 0x1e1   : > { %v659_v22 = vpop.f32.mrb[39].mxu0  ;;  %1868 = vmatmul.mubr.f32.gmra.mrb[34].mxu1 %v657_v16 }
 0x1e4   : > { %v662_v25 = vpop.f32.mrb[40].mxu0 }
 0x1e5   : > { %v664_v26 = vpop.f32.mrb[41].mxu0  ;;  %1870 = vmatprep.mubr.f32.mxu1 %v662_v25 }
 0x1e8   : > { %v667_v32 = vpop.f32.mrb[42].mxu0 }
 0x1e9   : > { %v669_v35 = vpop.f32.mrb[43].mxu0  ;;  %1871 = vmatmul.mubr.f32.gmra.mrb[36].mxu1 %v667_v32 }
 0x1ec   : > { %v672_v38 = vpop.f32.mrb[44].mxu0 }
 0x1ed   : > { %v674_v44 = vpop.f32.mrb[45].mxu0  ;;  %1873 = vmatprep.mubr.f32.mxu1 %v672_v38 }
 0x1f0   : > { %v677_v47 = vpop.f32.mrb[46].mxu0 }
 0x1f1   : > { %v679_v50 = vpop.f32.mrb[47].mxu0  ;;  %1874 = vmatmul.mubr.f32.gmra.mrb[38].mxu1 %v677_v47 }
 0x1f2   : > { %1876 = vmatprep.mubr.f32.mxu1 %v2813_v29 }
 0x1f5   : > { %1877 = vmatmul.mubr.f32.gmra.mrb[40].mxu1 %v2815_v41 }
 0x1f6   : > { %1879 = vmatprep.mubr.f32.mxu1 %v2817_v51 }
 0x1f9   : > { %1880 = vmatmul.mubr.f32.gmra.mrb[42].mxu1 %v2819_v55 }
 0x1fa   : > { %1882 = vmatprep.mubr.f32.mxu1 %v2821_v59 }
 0x1fd   : > { %1883 = vmatmul.mubr.f32.gmra.mrb[44].mxu1 %v2823_v63 }
 0x1fe   : > { %1885 = vmatprep.mubr.f32.mxu1 %v712_v9 }
 0x201   : > { %1886 = vmatmul.mubr.f32.gmra.mrb[46].mxu1 %v717_v19 }
 0x26c   : > { %v1842_v52 = vpop.f32.mrb[16].mxu1 }
 0x26d   : > { %v2832_v53 = vadd.f32 %v1842_v52, %v2595_v2  ;;  %v902_v54 = vpop.f32.mrb[17].mxu1 }
 0x26e   : > { %v2836_v29 = vadd.f32 %v902_v54, %v2592_v1 }
 0x26f   : > { %1129 = vadd.xlane.f32.xlu0 %v2832_v53 }
 0x273   : > { %1127 = vadd.xlane.f32.xlu0 %v2836_v29 }
 0x274   : > { %v1845_v41 = vpop.f32.mrb[18].mxu1 }
 0x275   : > { %v2840_v51 = vadd.f32 %v1845_v41, %v2603_v5  ;;  %v912_v55 = vpop.f32.mrb[19].mxu1 }
 0x276   : > { %v2844_v59 = vadd.f32 %v912_v55, %v2598_v3 }
 0x277   : > { %1133 = vadd.xlane.f32.xlu1 %v2840_v51 }
 0x27b   : > { %1131 = vadd.xlane.f32.xlu1 %v2844_v59 }
 0x27c   : > { %v1848_v2 = vpop.f32.mrb[20].mxu1 }
 0x27d   : > { %v2848_v63 = vadd.f32 %v1848_v2, %v2612_v8  ;;  %v922_v1 = vpop.f32.mrb[21].mxu1 }
 0x27e   : > { %v2851_v9 = vadd.f32 %v922_v1, %v2609_v7 }
 0x27f   : > { %1137 = vadd.xlane.f32.xlu1 %v2848_v63 }
 0x280   : > { %1135 = vadd.xlane.f32.xlu0 %v2851_v9 }
 0x284   : > { %v1851_v5 = vpop.f32.mrb[22].mxu1 }
 0x285   : > { %v2856_v19 = vadd.f32 %v1851_v5, %v2622_v11  ;;  %v932_v3 = vpop.f32.mrb[23].mxu1 }
 0x286   : > { %v2859_v56 = vadd.f32 %v932_v3, %v2619_v10 }
 0x287   : > { %1141 = vadd.xlane.f32.xlu1 %v2856_v19 }
 0x288   : > { %1139 = vadd.xlane.f32.xlu0 %v2859_v56 }
 0x28c   : > { %v1854_v8 = vpop.f32.mrb[24].mxu1 }
 0x28d   : > { %v2864_v7 = vadd.f32 %v1854_v8, %v2633_v15  ;;  %v942_v57 = vpop.f32.mrb[25].mxu1 }
 0x28e   : > { %v2867_v58 = vadd.f32 %v942_v57, %v2630_v14 }
 0x28f   : > { %1145 = vadd.xlane.f32.xlu1 %v2864_v7 }
 0x290   : > { %1143 = vadd.xlane.f32.xlu0 %v2867_v58 }
 0x294   : > { %v1857_v11 = vpop.f32.mrb[26].mxu1 }
 0x295   : > { %v2872_v10 = vadd.f32 %v1857_v11, %v2643_v18  ;;  %v952_v60 = vpop.f32.mrb[27].mxu1 }
 0x296   : > { %v2875_v61 = vadd.f32 %v952_v60, %v2640_v17 }
 0x297   : > { %1149 = vadd.xlane.f32.xlu1 %v2872_v10 }
 0x298   : > { %1147 = vadd.xlane.f32.xlu0 %v2875_v61 }
 0x29c   : > { %v1860_v15 = vpop.f32.mrb[28].mxu1 }
 0x29d   : > { %v2880_v14 = vadd.f32 %v1860_v15, %v2653_v21  ;;  %v962_v62 = vpop.f32.mrb[29].mxu1 }
 0x29e   : > { %v2883_v0 = vadd.f32 %v962_v62, %v2650_v20 }
 0x29f   : > { %1153 = vadd.xlane.f32.xlu1 %v2880_v14 }
 0x2a0   : > { %1151 = vadd.xlane.f32.xlu0 %v2883_v0 }
 0x2a4   : > { %v1863_v18 = vpop.f32.mrb[30].mxu1 }
 0x2a5   : > { %v2888_v17 = vadd.f32 %v1863_v18, %v2663_v24  ;;  %v972_v4 = vpop.f32.mrb[31].mxu1 }
 0x2a6   : > { %v2891_v6 = vadd.f32 %v972_v4, %v2660_v23 }
 0x2a7   : > { %1157 = vadd.xlane.f32.xlu1 %v2888_v17 }
 0x2a8   : > { %1155 = vadd.xlane.f32.xlu0 %v2891_v6 }
 0x2ac   : > { %v1866_v21 = vpop.f32.mrb[32].mxu1 }
 0x2ad   : > { %v2896_v20 = vadd.f32 %v1866_v21, %v2674_v28  ;;  %v982_v12 = vpop.f32.mrb[33].mxu1 }
 0x2ae   : > { %v2899_v13 = vadd.f32 %v982_v12, %v2671_v27 }
 0x2af   : > { %1161 = vadd.xlane.f32.xlu1 %v2896_v20 }
 0x2b0   : > { %1159 = vadd.xlane.f32.xlu0 %v2899_v13 }
 0x2b4   : > { %v1869_v24 = vpop.f32.mrb[34].mxu1 }
 0x2b5   : > { %v2904_v23 = vadd.f32 %v1869_v24, %v2684_v31  ;;  %v992_v16 = vpop.f32.mrb[35].mxu1 }
 0x2b6   : > { %v2907_v22 = vadd.f32 %v992_v16, %v2681_v30 }
 0x2b7   : > { %1165 = vadd.xlane.f32.xlu1 %v2904_v23 }
 0x2b8   : > { %1163 = vadd.xlane.f32.xlu0 %v2907_v22 }
 0x2bc   : > { %v1872_v28 = vpop.f32.mrb[36].mxu1 }
 0x2bd   : > { %v2912_v27 = vadd.f32 %v1872_v28, %v2694_v34  ;;  %v1002_v25 = vpop.f32.mrb[37].mxu1 }
 0x2be   : > { %v2915_v26 = vadd.f32 %v1002_v25, %v2691_v33 }
 0x2bf   : > { %1169 = vadd.xlane.f32.xlu1 %v2912_v27 }
 0x2c0   : > { %1167 = vadd.xlane.f32.xlu0 %v2915_v26 }
 0x2c4   : > { %v1875_v31 = vpop.f32.mrb[38].mxu1 }
 0x2c5   : > { %v2920_v30 = vadd.f32 %v1875_v31, %v2704_v37  ;;  %v1012_v32 = vpop.f32.mrb[39].mxu1 }
 0x2c6   : > { %v2923_v35 = vadd.f32 %v1012_v32, %v2701_v36 }
 0x2c7   : > { %1173 = vadd.xlane.f32.xlu1 %v2920_v30 }
 0x2c8   : > { %1171 = vadd.xlane.f32.xlu0 %v2923_v35  ;;  %v1878_v34 = vpop.f32.mrb[40].mxu1 }
 0x2c9   : > { %v2928_v33 = vadd.f32 %v1878_v34, %v2714_v40  ;;  %v1022_v38 = vpop.f32.mrb[41].mxu1 }
 0x2ca   : > { %v2931_v44 = vadd.f32 %v1022_v38, %v2711_v39 }
 0x2cb   : > { %1177 = vadd.xlane.f32.xlu1 %v2928_v33 }
 0x2cc   : > { %1175 = vadd.xlane.f32.xlu0 %v2931_v44  ;;  %v1881_v37 = vpop.f32.mrb[42].mxu1 }
 0x2cd   : > { %v2936_v36 = vadd.f32 %v1881_v37, %v2724_v43  ;;  %v1032_v47 = vpop.f32.mrb[43].mxu1 }
 0x2ce   : > { %v2939_v50 = vadd.f32 %v1032_v47, %v2721_v42 }
 0x2cf   : > { %1181 = vadd.xlane.f32.xlu1 %v2936_v36 }
 0x2d0   : > { %1179 = vadd.xlane.f32.xlu0 %v2939_v50  ;;  %v1884_v40 = vpop.f32.mrb[44].mxu1 }
 0x2d1   : > { %v2944_v39 = vadd.f32 %v1884_v40, %v2734_v46  ;;  %v1042_v52 = vpop.f32.mrb[45].mxu1 }
 0x2d2   : > { %v2947_v54 = vadd.f32 %v1042_v52, %v2731_v45 }
 0x2d3   : > { %1185 = vadd.xlane.f32.xlu1 %v2944_v39 }
 0x2d4   : > { %1183 = vadd.xlane.f32.xlu0 %v2947_v54  ;;  %v1887_v43 = vpop.f32.mrb[46].mxu1 }
 0x2d5   : > { %v2952_v42 = vadd.f32 %v1887_v43, %v2744_v49  ;;  %v1052_v41 = vpop.f32.mrb[47].mxu1 }
 0x2d6   : > { %v2955_v55 = vadd.f32 %v1052_v41, %v2741_v48 }
 0x2d7   : > { %1189 = vadd.xlane.f32.xlu1 %v2952_v42 }
 0x2d8   : > { %1187 = vadd.xlane.f32.xlu0 %v2955_v55 }
 0x2fc   : > { %v1130_v46 = vpop.xlane.xlu0 %1129 }
 0x2fd   : > { %v1193_v2 = vmul.f32 0.0078125, %v1130_v46 }
 0x2ff   : > { %v2960_v45 = vsub.f32 %v2832_v53, %v1193_v2 }
 0x300   : > { %v1128_v1 = vpop.xlane.xlu0 %1127 }
 0x301   : > { %v1192_v5 = vmul.f32 0.0078125, %v1128_v1  ;;  %v1257_v3 = vmul.f32 %v2960_v45, %v2960_v45 }
 0x303   : > { %v2965_v49 = vsub.f32 %v2836_v29, %v1192_v5  ;;  %1290 = vadd.xlane.f32.xlu1 %v1257_v3 }
 0x304   : > { %v1134_v48 = vpop.xlane.xlu1 %1133 }
 0x305   : > { %v1195_v8 = vmul.f32 0.0078125, %v1134_v48  ;;  %v1256_v57 = vmul.f32 %v2965_v49, %v2965_v49 }
 0x307   : > { %v2970_v11 = vsub.f32 %v2840_v51, %v1195_v8  ;;  %1288 = vadd.xlane.f32.xlu0 %v1256_v57 }
 0x308   : > { %v1132_v53 = vpop.xlane.xlu1 %1131 }
 0x309   : > { %v1194_v60 = vmul.f32 0.0078125, %v1132_v53  ;;  %v1259_v15 = vmul.f32 %v2970_v11, %v2970_v11 }
 0x30b   : > { %v2975_v62 = vsub.f32 %v2844_v59, %v1194_v60  ;;  %1294 = vadd.xlane.f32.xlu1 %v1259_v15 }
 0x30c   : > { %v1138_v29 = vpop.xlane.xlu1 %1137 }
 0x30d   : > { %v1197_v18 = vmul.f32 0.0078125, %v1138_v29  ;;  %v1136_v4 = vpop.xlane.xlu0 %1135  ;;  %v1258_v21 = vmul.f32 %v2975_v62, %v2975_v62 }
 0x30e   : > { %v1196_v12 = vmul.f32 0.0078125, %v1136_v4 }
 0x30f   : > { %v2980_v51 = vsub.f32 %v2848_v63, %v1197_v18  ;;  %1292 = vadd.xlane.f32.xlu0 %v1258_v21 }
 0x310   : > { %v2983_v24 = vsub.f32 %v2851_v9, %v1196_v12 }
 0x311   : > { %v1261_v16 = vmul.f32 %v2980_v51, %v2980_v51 }
 0x312   : > { %v1260_v59 = vmul.f32 %v2983_v24, %v2983_v24 }
 0x313   : > { %1298 = vadd.xlane.f32.xlu1 %v1261_v16 }
 0x314   : > { %v1142_v28 = vpop.xlane.xlu1 %1141  ;;  %1296 = vadd.xlane.f32.xlu0 %v1260_v59 }
 0x315   : > { %v1199_v25 = vmul.f32 0.0078125, %v1142_v28  ;;  %v1140_v31 = vpop.xlane.xlu0 %1139 }
 0x316   : > { %v1198_v32 = vmul.f32 0.0078125, %v1140_v31 }
 0x317   : > { %v2990_v34 = vsub.f32 %v2856_v19, %v1199_v25 }
 0x318   : > { %v2993_v63 = vsub.f32 %v2859_v56, %v1198_v32 }
 0x319   : > { %v1263_v9 = vmul.f32 %v2990_v34, %v2990_v34 }
 0x31a   : > { %v1262_v38 = vmul.f32 %v2993_v63, %v2993_v63 }
 0x31b   : > { %1302 = vadd.xlane.f32.xlu1 %v1263_v9 }
 0x31c   : > { %v1146_v37 = vpop.xlane.xlu1 %1145  ;;  %1300 = vadd.xlane.f32.xlu0 %v1262_v38 }
 0x31d   : > { %v1201_v47 = vmul.f32 0.0078125, %v1146_v37  ;;  %v1144_v40 = vpop.xlane.xlu0 %1143 }
 0x31e   : > { %v1200_v52 = vmul.f32 0.0078125, %v1144_v40 }
 0x31f   : > { %v3000_v43 = vsub.f32 %v2864_v7, %v1201_v47 }
 0x320   : > { %v3003_v19 = vsub.f32 %v2867_v58, %v1200_v52 }
 0x321   : > { %v1265_v56 = vmul.f32 %v3000_v43, %v3000_v43 }
 0x322   : > { %v1264_v41 = vmul.f32 %v3003_v19, %v3003_v19 }
 0x323   : > { %1306 = vadd.xlane.f32.xlu1 %v1265_v56 }
 0x324   : > { %v1150_v46 = vpop.xlane.xlu1 %1149  ;;  %1304 = vadd.xlane.f32.xlu0 %v1264_v41 }
 0x325   : > { %v1203_v2 = vmul.f32 0.0078125, %v1150_v46  ;;  %v1148_v1 = vpop.xlane.xlu0 %1147 }
 0x326   : > { %v1202_v5 = vmul.f32 0.0078125, %v1148_v1 }
 0x327   : > { %v3010_v3 = vsub.f32 %v2872_v10, %v1203_v2 }
 0x328   : > { %v3013_v7 = vsub.f32 %v2875_v61, %v1202_v5 }
 0x329   : > { %v1267_v58 = vmul.f32 %v3010_v3, %v3010_v3 }
 0x32a   : > { %v1266_v48 = vmul.f32 %v3013_v7, %v3013_v7 }
 0x32b   : > { %1310 = vadd.xlane.f32.xlu1 %v1267_v58 }
 0x32c   : > { %v1154_v8 = vpop.xlane.xlu1 %1153  ;;  %1308 = vadd.xlane.f32.xlu0 %v1266_v48 }
 0x32d   : > { %v1205_v57 = vmul.f32 0.0078125, %v1154_v8  ;;  %v1152_v53 = vpop.xlane.xlu0 %1151 }
 0x32e   : > { %v1204_v60 = vmul.f32 0.0078125, %v1152_v53 }
 0x32f   : > { %v3020_v15 = vsub.f32 %v2880_v14, %v1205_v57 }
 0x330   : > { %v3023_v10 = vsub.f32 %v2883_v0, %v1204_v60 }
 0x331   : > { %v1269_v61 = vmul.f32 %v3020_v15, %v3020_v15 }
 0x332   : > { %v1268_v29 = vmul.f32 %v3023_v10, %v3023_v10 }
 0x333   : > { %1314 = vadd.xlane.f32.xlu1 %v1269_v61 }
 0x334   : > { %v1158_v18 = vpop.xlane.xlu1 %1157  ;;  %1312 = vadd.xlane.f32.xlu0 %v1268_v29 }
 0x335   : > { %v1207_v4 = vmul.f32 0.0078125, %v1158_v18  ;;  %v1156_v21 = vpop.xlane.xlu0 %1155 }
 0x336   : > { %v1206_v12 = vmul.f32 0.0078125, %v1156_v21 }
 0x337   : > { %v3030_v16 = vsub.f32 %v2888_v17, %v1207_v4 }
 0x338   : > { %v3033_v14 = vsub.f32 %v2891_v6, %v1206_v12 }
 0x339   : > { %v1271_v0 = vmul.f32 %v3030_v16, %v3030_v16 }
 0x33a   : > { %v1270_v59 = vmul.f32 %v3033_v14, %v3033_v14 }
 0x33b   : > { %1318 = vadd.xlane.f32.xlu1 %v1271_v0 }
 0x33c   : > { %v1162_v28 = vpop.xlane.xlu1 %1161  ;;  %1316 = vadd.xlane.f32.xlu0 %v1270_v59 }
 0x33d   : > { %v1209_v25 = vmul.f32 0.0078125, %v1162_v28  ;;  %v1160_v31 = vpop.xlane.xlu0 %1159 }
 0x33e   : > { %v1208_v32 = vmul.f32 0.0078125, %v1160_v31 }
 0x33f   : > { %v3040_v9 = vsub.f32 %v2896_v20, %v1209_v25 }
 0x340   : > { %v3043_v17 = vsub.f32 %v2899_v13, %v1208_v32 }
 0x341   : > { %v1273_v6 = vmul.f32 %v3040_v9, %v3040_v9 }
 0x342   : > { %v1272_v38 = vmul.f32 %v3043_v17, %v3043_v17 }
 0x343   : > { %1322 = vadd.xlane.f32.xlu1 %v1273_v6 }
 0x344   : > { %v1166_v37 = vpop.xlane.xlu1 %1165  ;;  %1320 = vadd.xlane.f32.xlu0 %v1272_v38 }
 0x345   : > { %v1211_v47 = vmul.f32 0.0078125, %v1166_v37  ;;  %v1164_v40 = vpop.xlane.xlu0 %1163 }
 0x346   : > { %v1210_v52 = vmul.f32 0.0078125, %v1164_v40 }
 0x347   : > { %v3050_v56 = vsub.f32 %v2904_v23, %v1211_v47 }
 0x348   : > { %v3053_v20 = vsub.f32 %v2907_v22, %v1210_v52 }
 0x349   : > { %v1275_v13 = vmul.f32 %v3050_v56, %v3050_v56 }
 0x34a   : > { %v1274_v41 = vmul.f32 %v3053_v20, %v3053_v20 }
 0x34b   : > { %1326 = vadd.xlane.f32.xlu1 %v1275_v13 }
 0x34c   : > { %v1170_v46 = vpop.xlane.xlu1 %1169  ;;  %1324 = vadd.xlane.f32.xlu0 %v1274_v41 }
 0x34d   : > { %v1213_v2 = vmul.f32 0.0078125, %v1170_v46  ;;  %v1168_v1 = vpop.xlane.xlu0 %1167 }
 0x34e   : > { %v1212_v5 = vmul.f32 0.0078125, %v1168_v1 }
 0x34f   : > { %v3060_v58 = vsub.f32 %v2912_v27, %v1213_v2 }
 0x350   : > { %v3063_v23 = vsub.f32 %v2915_v26, %v1212_v5 }
 0x351   : > { %v1277_v22 = vmul.f32 %v3060_v58, %v3060_v58 }
 0x352   : > { %v1276_v48 = vmul.f32 %v3063_v23, %v3063_v23 }
 0x353   : > { %1330 = vadd.xlane.f32.xlu1 %v1277_v22 }
 0x354   : > { %v1174_v8 = vpop.xlane.xlu1 %1173  ;;  %1328 = vadd.xlane.f32.xlu0 %v1276_v48 }
 0x355   : > { %v1215_v57 = vmul.f32 0.0078125, %v1174_v8  ;;  %v1172_v53 = vpop.xlane.xlu0 %1171 }
 0x356   : > { %v1214_v60 = vmul.f32 0.0078125, %v1172_v53 }
 0x357   : > { %v3070_v61 = vsub.f32 %v2920_v30, %v1215_v57 }
 0x358   : > { %v3073_v27 = vsub.f32 %v2923_v35, %v1214_v60  ;;  %v1178_v26 = vpop.xlane.xlu1 %1177 }
 0x359   : > { %v1217_v29 = vmul.f32 0.0078125, %v1178_v26  ;;  %v1176_v18 = vpop.xlane.xlu0 %1175  ;;  %v1279_v4 = vmul.f32 %v3070_v61, %v3070_v61 }
 0x35a   : > { %v1216_v21 = vmul.f32 0.0078125, %v1176_v18  ;;  %v1278_v12 = vmul.f32 %v3073_v27, %v3073_v27 }
 0x35b   : > { %v3080_v0 = vsub.f32 %v2928_v33, %v1217_v29  ;;  %1334 = vadd.xlane.f32.xlu1 %v1279_v4 }
 0x35c   : > { %v3083_v30 = vsub.f32 %v2931_v44, %v1216_v21  ;;  %v1182_v59 = vpop.xlane.xlu1 %1181  ;;  %1332 = vadd.xlane.f32.xlu0 %v1278_v12 }
 0x35d   : > { %v1219_v35 = vmul.f32 0.0078125, %v1182_v59  ;;  %v1180_v28 = vpop.xlane.xlu0 %1179  ;;  %v1281_v25 = vmul.f32 %v3080_v0, %v3080_v0  ;;  %v3122_v59 = vld [vmem:[%s3320_s3] ss:$0 sm:$0xff] }
 0x35e   : > { %v1218_v31 = vmul.f32 0.0078125, %v1180_v28  ;;  %v1280_v32 = vmul.f32 %v3083_v30, %v3083_v30 }
 0x35f   : > { %v3090_v6 = vsub.f32 %v2936_v36, %v1219_v35  ;;  %1338 = vadd.xlane.f32.xlu1 %v1281_v25 }
 0x360   : > { %v3093_v33 = vsub.f32 %v2939_v50, %v1218_v31  ;;  %v1186_v44 = vpop.xlane.xlu1 %1185  ;;  %1336 = vadd.xlane.f32.xlu0 %v1280_v32  ;;  %v3128_v31 = vld [vmem:[%s3321_s4] ss:$0 sm:$0xff] }
 0x361   : > { %v1221_v38 = vmul.f32 0.0078125, %v1186_v44  ;;  %v1184_v37 = vpop.xlane.xlu0 %1183  ;;  %v1283_v47 = vmul.f32 %v3090_v6, %v3090_v6 }
 0x362   : > { %v1220_v40 = vmul.f32 0.0078125, %v1184_v37  ;;  %v1282_v52 = vmul.f32 %v3093_v33, %v3093_v33 }
 0x363   : > { %v3100_v13 = vsub.f32 %v2944_v39, %v1221_v38  ;;  %1342 = vadd.xlane.f32.xlu1 %v1283_v47 }
 0x364   : > { %v3103_v36 = vsub.f32 %v2947_v54, %v1220_v40  ;;  %v1190_v50 = vpop.xlane.xlu1 %1189  ;;  %1340 = vadd.xlane.f32.xlu0 %v1282_v52 }
 0x365   : > { %v1223_v41 = vmul.f32 0.0078125, %v1190_v50  ;;  %v1188_v46 = vpop.xlane.xlu0 %1187  ;;  %v1285_v2 = vmul.f32 %v3100_v13, %v3100_v13 }
 0x366   : > { %v1222_v1 = vmul.f32 0.0078125, %v1188_v46  ;;  %v1284_v5 = vmul.f32 %v3103_v36, %v3103_v36 }
 0x367   : > { %v3110_v22 = vsub.f32 %v2952_v42, %v1223_v41  ;;  %1346 = vadd.xlane.f32.xlu1 %v1285_v2 }
 0x368   : > { %v3113_v39 = vsub.f32 %v2955_v55, %v1222_v1  ;;  %1344 = vadd.xlane.f32.xlu0 %v1284_v5 }
 0x369   : > { %v1287_v54 = vmul.f32 %v3110_v22, %v3110_v22 }
 0x36a   : > { %v1286_v48 = vmul.f32 %v3113_v39, %v3113_v39 }
 0x36b   : > { %1350 = vadd.xlane.f32.xlu1 %v1287_v54 }
 0x36c   : > { %1348 = vadd.xlane.f32.xlu0 %v1286_v48 }
 0x390   : > { %v1291_v8 = vpop.xlane.xlu1 %1290 }
 0x391   : > { %v1353_v57 = vmul.f32 0.0078125, %v1291_v8 }
 0x393   : > { %v1385_v53 = vadd.f32 1e-05, %v1353_v57 }
 0x394   : > { %v1289_v60 = vpop.xlane.xlu0 %1288 }
 0x395   : > { %2085 = vrsqrt.f32 %v1385_v53  ;;  %v1352_v42 = vmul.f32 0.0078125, %v1289_v60 }
 0x397   : > { %v1384_v26 = vadd.f32 1e-05, %v1352_v42 }
 0x398   : > { %v1295_v29 = vpop.xlane.xlu1 %1294 }
 0x399   : > { %2087 = vrsqrt.f32 %v1384_v26  ;;  %v1355_v55 = vmul.f32 0.0078125, %v1295_v29 }
 0x39b   : > { %v1387_v18 = vadd.f32 1e-05, %v1355_v55 }
 0x39c   : > { %v1293_v4 = vpop.xlane.xlu0 %1292 }
 0x39d   : > { %2089 = vrsqrt.f32 %v1387_v18  ;;  %v1354_v21 = vmul.f32 0.0078125, %v1293_v4 }
 0x39f   : > { %v2086_v12 = vpop.eup %2085  ;;  %v1386_v35 = vadd.f32 1e-05, %v1354_v21 }
 0x3a0   : > { %v1449_v28 = vmul.f32 %v2086_v12, %v2960_v45  ;;  %v1299_v25 = vpop.xlane.xlu1 %1298 }
 0x3a1   : > { %2091 = vrsqrt.f32 %v1386_v35  ;;  %v1357_v32 = vmul.f32 0.0078125, %v1299_v25  ;;  %v1297_v44 = vpop.xlane.xlu0 %1296 }
 0x3a2   : > { %v1488_v38 = vmul.f32 %v3122_v59, %v1449_v28  ;;  %v1356_v37 = vmul.f32 0.0078125, %v1297_v44 }
 0x3a3   : > { %v2088_v47 = vpop.eup %2087  ;;  %v1389_v40 = vadd.f32 1e-05, %v1357_v32 }
 0x3a4   : > { %v1527_v52 = vadd.f32 %v3128_v31, %v1488_v38  ;;  %v1448_v50 = vmul.f32 %v2088_v47, %v2965_v49  ;;  %v1388_v41 = vadd.f32 1e-05, %v1356_v37 }
 0x3a5   : > { %2093 = vrsqrt.f32 %v1389_v40 }
 0x3a6   : > { %1559 = vst [vmem:[%s3135_s25 + $0x8] sm:$0xff] %v1527_v52  ;;  %v1487_v45 = vmul.f32 %v3122_v59, %v1448_v50  ;;  %2095 = vrsqrt.f32 %v1388_v41 }
 0x3a7   : > { %v2090_v46 = vpop.eup %2089 }
 0x3a8   : > { %v1526_v2 = vadd.f32 %v3128_v31, %v1487_v45  ;;  %v1451_v1 = vmul.f32 %v2090_v46, %v2970_v11  ;;  %v1303_v5 = vpop.xlane.xlu1 %1302 }
 0x3a9   : > { %v1359_v54 = vmul.f32 0.0078125, %v1303_v5  ;;  %v1301_v49 = vpop.xlane.xlu0 %1300 }
 0x3aa   : > { %1558 = vst [vmem:[%s3135_s25] sm:$0xff] %v1526_v2  ;;  %v1490_v48 = vmul.f32 %v3122_v59, %v1451_v1  ;;  %v1358_v8 = vmul.f32 0.0078125, %v1301_v49 }
 0x3ab   : > { %v2092_v57 = vpop.eup %2091  ;;  %v1391_v53 = vadd.f32 1e-05, %v1359_v54 }
 0x3ac   : > { %v1529_v60 = vadd.f32 %v3128_v31, %v1490_v48  ;;  %v1450_v42 = vmul.f32 %v2092_v57, %v2975_v62  ;;  %v1390_v26 = vadd.f32 1e-05, %v1358_v8 }
 0x3ad   : > { %2097 = vrsqrt.f32 %v1391_v53 }
 0x3ae   : > { %1561 = vst [vmem:[%s3135_s25 + $0x18] sm:$0xff] %v1529_v60  ;;  %v1489_v29 = vmul.f32 %v3122_v59, %v1450_v42  ;;  %2099 = vrsqrt.f32 %v1390_v26 }
 0x3af   : > { %v2094_v11 = vpop.eup %2093 }
 0x3b0   : > { %v2096_v55 = vpop.eup %2095  ;;  %v1528_v18 = vadd.f32 %v3128_v31, %v1489_v29  ;;  %v1453_v4 = vmul.f32 %v2094_v11, %v2980_v51  ;;  %v1307_v21 = vpop.xlane.xlu1 %1306 }
 0x3b1   : > { %v1452_v12 = vmul.f32 %v2096_v55, %v2983_v24  ;;  %v1361_v35 = vmul.f32 0.0078125, %v1307_v21  ;;  %v1305_v28 = vpop.xlane.xlu0 %1304 }
 0x3b2   : > { %1560 = vst [vmem:[%s3135_s25 + $0x10] sm:$0xff] %v1528_v18  ;;  %v1492_v62 = vmul.f32 %v3122_v59, %v1453_v4  ;;  %v1360_v25 = vmul.f32 0.0078125, %v1305_v28 }
 0x3b3   : > { %v1491_v32 = vmul.f32 %v3122_v59, %v1452_v12  ;;  %v1393_v44 = vadd.f32 1e-05, %v1361_v35 }
 0x3b4   : > { %v1531_v38 = vadd.f32 %v3128_v31, %v1492_v62  ;;  %v1392_v37 = vadd.f32 1e-05, %v1360_v25 }
 0x3b5   : > { %v1530_v47 = vadd.f32 %v3128_v31, %v1491_v32  ;;  %2101 = vrsqrt.f32 %v1393_v44 }
 0x3b6   : > { %1563 = vst [vmem:[%s3135_s25 + $0x28] sm:$0xff] %v1531_v38  ;;  %2103 = vrsqrt.f32 %v1392_v37 }
 0x3b7   : > { %v2098_v51 = vpop.eup %2097  ;;  %1562 = vst [vmem:[%s3135_s25 + $0x20] sm:$0xff] %v1530_v47 }
 0x3b8   : > { %v2100_v24 = vpop.eup %2099  ;;  %v1455_v40 = vmul.f32 %v2098_v51, %v2990_v34  ;;  %v1311_v52 = vpop.xlane.xlu1 %1310 }
 0x3b9   : > { %v1454_v50 = vmul.f32 %v2100_v24, %v2993_v63  ;;  %v1363_v41 = vmul.f32 0.0078125, %v1311_v52  ;;  %v1309_v45 = vpop.xlane.xlu0 %1308 }
 0x3ba   : > { %v1494_v46 = vmul.f32 %v3122_v59, %v1455_v40  ;;  %v1362_v2 = vmul.f32 0.0078125, %v1309_v45 }
 0x3bb   : > { %v1493_v1 = vmul.f32 %v3122_v59, %v1454_v50  ;;  %v1395_v5 = vadd.f32 1e-05, %v1363_v41 }
 0x3bc   : > { %v1533_v54 = vadd.f32 %v3128_v31, %v1494_v46  ;;  %v1394_v49 = vadd.f32 1e-05, %v1362_v2 }
 0x3bd   : > { %v1532_v48 = vadd.f32 %v3128_v31, %v1493_v1  ;;  %2105 = vrsqrt.f32 %v1395_v5 }
 0x3be   : > { %1565 = vst [vmem:[%s3135_s25 + $0x38] sm:$0xff] %v1533_v54  ;;  %2107 = vrsqrt.f32 %v1394_v49 }
 0x3bf   : > { %v2102_v34 = vpop.eup %2101  ;;  %1564 = vst [vmem:[%s3135_s25 + $0x30] sm:$0xff] %v1532_v48 }
 0x3c0   : > { %v2104_v63 = vpop.eup %2103  ;;  %v1457_v8 = vmul.f32 %v2102_v34, %v3000_v43  ;;  %v1315_v57 = vpop.xlane.xlu1 %1314 }
 0x3c1   : > { %v1456_v53 = vmul.f32 %v2104_v63, %v3003_v19  ;;  %v1365_v60 = vmul.f32 0.0078125, %v1315_v57  ;;  %v1313_v42 = vpop.xlane.xlu0 %1312 }
 0x3c2   : > { %v1496_v26 = vmul.f32 %v3122_v59, %v1457_v8  ;;  %v1364_v29 = vmul.f32 0.0078125, %v1313_v42 }
 0x3c3   : > { %v1495_v11 = vmul.f32 %v3122_v59, %v1456_v53  ;;  %v1397_v55 = vadd.f32 1e-05, %v1365_v60 }
 0x3c4   : > { %v1535_v18 = vadd.f32 %v3128_v31, %v1496_v26  ;;  %v1396_v4 = vadd.f32 1e-05, %v1364_v29 }
 0x3c5   : > { %v1534_v21 = vadd.f32 %v3128_v31, %v1495_v11  ;;  %2109 = vrsqrt.f32 %v1397_v55 }
 0x3c6   : > { %1567 = vst [vmem:[%s3135_s25 + $0x48] sm:$0xff] %v1535_v18  ;;  %2111 = vrsqrt.f32 %v1396_v4 }
 0x3c7   : > { %v2106_v43 = vpop.eup %2105  ;;  %1566 = vst [vmem:[%s3135_s25 + $0x40] sm:$0xff] %v1534_v21 }
 0x3c8   : > { %v2108_v19 = vpop.eup %2107  ;;  %v1459_v12 = vmul.f32 %v2106_v43, %v3010_v3  ;;  %v1319_v35 = vpop.xlane.xlu1 %1318 }
 0x3c9   : > { %v1458_v28 = vmul.f32 %v2108_v19, %v3013_v7  ;;  %v1367_v62 = vmul.f32 0.0078125, %v1319_v35  ;;  %v1317_v25 = vpop.xlane.xlu0 %1316 }
 0x3ca   : > { %v1498_v32 = vmul.f32 %v3122_v59, %v1459_v12  ;;  %v1366_v44 = vmul.f32 0.0078125, %v1317_v25 }
 0x3cb   : > { %v1497_v38 = vmul.f32 %v3122_v59, %v1458_v28  ;;  %v1399_v37 = vadd.f32 1e-05, %v1367_v62 }
 0x3cc   : > { %v1537_v47 = vadd.f32 %v3128_v31, %v1498_v32  ;;  %v1398_v51 = vadd.f32 1e-05, %v1366_v44 }
 0x3cd   : > { %v1536_v24 = vadd.f32 %v3128_v31, %v1497_v38  ;;  %2113 = vrsqrt.f32 %v1399_v37 }
 0x3ce   : > { %1569 = vst [vmem:[%s3135_s25 + $0x58] sm:$0xff] %v1537_v47  ;;  %2115 = vrsqrt.f32 %v1398_v51 }
 0x3cf   : > { %v2110_v3 = vpop.eup %2109  ;;  %1568 = vst [vmem:[%s3135_s25 + $0x50] sm:$0xff] %v1536_v24 }
 0x3d0   : > { %v2112_v7 = vpop.eup %2111  ;;  %v1461_v40 = vmul.f32 %v2110_v3, %v3020_v15  ;;  %v1323_v52 = vpop.xlane.xlu1 %1322 }
 0x3d1   : > { %v1460_v50 = vmul.f32 %v2112_v7, %v3023_v10  ;;  %v1369_v41 = vmul.f32 0.0078125, %v1323_v52  ;;  %v1321_v45 = vpop.xlane.xlu0 %1320 }
 0x3d2   : > { %v1500_v46 = vmul.f32 %v3122_v59, %v1461_v40  ;;  %v1368_v2 = vmul.f32 0.0078125, %v1321_v45 }
 0x3d3   : > { %v1499_v1 = vmul.f32 %v3122_v59, %v1460_v50  ;;  %v1401_v5 = vadd.f32 1e-05, %v1369_v41 }
 0x3d4   : > { %v1539_v54 = vadd.f32 %v3128_v31, %v1500_v46  ;;  %v1400_v49 = vadd.f32 1e-05, %v1368_v2 }
 0x3d5   : > { %v1538_v48 = vadd.f32 %v3128_v31, %v1499_v1  ;;  %2117 = vrsqrt.f32 %v1401_v5 }
 0x3d6   : > { %1571 = vst [vmem:[%s3135_s25 + $0x68] sm:$0xff] %v1539_v54  ;;  %2119 = vrsqrt.f32 %v1400_v49 }
 0x3d7   : > { %v2114_v15 = vpop.eup %2113  ;;  %1570 = vst [vmem:[%s3135_s25 + $0x60] sm:$0xff] %v1538_v48 }
 0x3d8   : > { %v2116_v10 = vpop.eup %2115  ;;  %v1463_v34 = vmul.f32 %v2114_v15, %v3030_v16  ;;  %v1327_v63 = vpop.xlane.xlu1 %1326 }
 0x3d9   : > { %v1462_v8 = vmul.f32 %v2116_v10, %v3033_v14  ;;  %v1371_v57 = vmul.f32 0.0078125, %v1327_v63  ;;  %v1325_v53 = vpop.xlane.xlu0 %1324 }
 0x3da   : > { %v1502_v60 = vmul.f32 %v3122_v59, %v1463_v34  ;;  %v1370_v42 = vmul.f32 0.0078125, %v1325_v53 }
 0x3db   : > { %v1501_v26 = vmul.f32 %v3122_v59, %v1462_v8  ;;  %v1403_v29 = vadd.f32 1e-05, %v1371_v57 }
 0x3dc   : > { %v1541_v11 = vadd.f32 %v3128_v31, %v1502_v60  ;;  %v1402_v55 = vadd.f32 1e-05, %v1370_v42 }
 0x3dd   : > { %v1540_v18 = vadd.f32 %v3128_v31, %v1501_v26  ;;  %2121 = vrsqrt.f32 %v1403_v29 }
 0x3de   : > { %1573 = vst [vmem:[%s3135_s25 + $0x78] sm:$0xff] %v1541_v11  ;;  %2123 = vrsqrt.f32 %v1402_v55 }
 0x3df   : > { %v2118_v16 = vpop.eup %2117  ;;  %1572 = vst [vmem:[%s3135_s25 + $0x70] sm:$0xff] %v1540_v18 }
 0x3e0   : > { %v2120_v14 = vpop.eup %2119  ;;  %v1465_v4 = vmul.f32 %v2118_v16, %v3040_v9  ;;  %v1331_v21 = vpop.xlane.xlu1 %1330 }
 0x3e1   : > { %v1464_v43 = vmul.f32 %v2120_v14, %v3043_v17  ;;  %v1373_v19 = vmul.f32 0.0078125, %v1331_v21  ;;  %v1329_v12 = vpop.xlane.xlu0 %1328 }
 0x3e2   : > { %v1504_v35 = vmul.f32 %v3122_v59, %v1465_v4  ;;  %v1372_v28 = vmul.f32 0.0078125, %v1329_v12 }
 0x3e3   : > { %v1503_v62 = vmul.f32 %v3122_v59, %v1464_v43  ;;  %v1405_v25 = vadd.f32 1e-05, %v1373_v19 }
 0x3e4   : > { %v1543_v32 = vadd.f32 %v3128_v31, %v1504_v35  ;;  %v1404_v44 = vadd.f32 1e-05, %v1372_v28 }
 0x3e5   : > { %v1542_v38 = vadd.f32 %v3128_v31, %v1503_v62  ;;  %2125 = vrsqrt.f32 %v1405_v25 }
 0x3e6   : > { %1575 = vst [vmem:[%s3135_s25 + $0x88] sm:$0xff] %v1543_v32  ;;  %2127 = vrsqrt.f32 %v1404_v44 }
 0x3e7   : > { %v2122_v9 = vpop.eup %2121  ;;  %1574 = vst [vmem:[%s3135_s25 + $0x80] sm:$0xff] %v1542_v38 }
 0x3e8   : > { %v2124_v37 = vpop.eup %2123  ;;  %v1467_v17 = vmul.f32 %v2122_v9, %v3050_v56  ;;  %v1335_v47 = vpop.xlane.xlu1 %1334 }
 0x3e9   : > { %v1466_v51 = vmul.f32 %v2124_v37, %v3053_v20  ;;  %v1375_v24 = vmul.f32 0.0078125, %v1335_v47  ;;  %v1333_v3 = vpop.xlane.xlu0 %1332 }
 0x3ea   : > { %v1506_v7 = vmul.f32 %v3122_v59, %v1467_v17  ;;  %v1374_v40 = vmul.f32 0.0078125, %v1333_v3 }
 0x3eb   : > { %v1505_v52 = vmul.f32 %v3122_v59, %v1466_v51  ;;  %v1407_v50 = vadd.f32 1e-05, %v1375_v24 }
 0x3ec   : > { %v1545_v41 = vadd.f32 %v3128_v31, %v1506_v7  ;;  %v1406_v45 = vadd.f32 1e-05, %v1374_v40  ;;  %v1339_v46 = vpop.xlane.xlu1 %1338 }
 0x3ed   : > { %v1544_v2 = vadd.f32 %v3128_v31, %v1505_v52  ;;  %2129 = vrsqrt.f32 %v1407_v50  ;;  %v1377_v56 = vmul.f32 0.0078125, %v1339_v46  ;;  %v1337_v1 = vpop.xlane.xlu0 %1336 }
 0x3ee   : > { %1577 = vst [vmem:[%s3135_s25 + $0x98] sm:$0xff] %v1545_v41  ;;  %2131 = vrsqrt.f32 %v1406_v45  ;;  %v1376_v20 = vmul.f32 0.0078125, %v1337_v1 }
 0x3ef   : > { %v2126_v5 = vpop.eup %2125  ;;  %1576 = vst [vmem:[%s3135_s25 + $0x90] sm:$0xff] %v1544_v2  ;;  %v1409_v54 = vadd.f32 1e-05, %v1377_v56 }
 0x3f0   : > { %v2128_v49 = vpop.eup %2127  ;;  %v1469_v48 = vmul.f32 %v2126_v5, %v3060_v58  ;;  %v1408_v15 = vadd.f32 1e-05, %v1376_v20  ;;  %v1343_v10 = vpop.xlane.xlu1 %1342 }
 0x3f1   : > { %v1468_v34 = vmul.f32 %v2128_v49, %v3063_v23  ;;  %2133 = vrsqrt.f32 %v1409_v54  ;;  %v1379_v63 = vmul.f32 0.0078125, %v1343_v10  ;;  %v1341_v8 = vpop.xlane.xlu0 %1340 }
 0x3f2   : > { %v1508_v57 = vmul.f32 %v3122_v59, %v1469_v48  ;;  %2135 = vrsqrt.f32 %v1408_v15  ;;  %v1378_v53 = vmul.f32 0.0078125, %v1341_v8 }
 0x3f3   : > { %v1507_v60 = vmul.f32 %v3122_v59, %v1468_v34  ;;  %v1411_v42 = vadd.f32 1e-05, %v1379_v63 }
 0x3f4   : > { %v1547_v26 = vadd.f32 %v3128_v31, %v1508_v57  ;;  %v1410_v29 = vadd.f32 1e-05, %v1378_v53  ;;  %v1347_v58 = vpop.xlane.xlu1 %1346 }
 0x3f5   : > { %v1546_v11 = vadd.f32 %v3128_v31, %v1507_v60  ;;  %2137 = vrsqrt.f32 %v1411_v42  ;;  %v1381_v23 = vmul.f32 0.0078125, %v1347_v58  ;;  %v1345_v55 = vpop.xlane.xlu0 %1344 }
 0x3f6   : > { %1579 = vst [vmem:[%s3135_s25 + $0xa8] sm:$0xff] %v1547_v26  ;;  %2139 = vrsqrt.f32 %v1410_v29  ;;  %v1380_v18 = vmul.f32 0.0078125, %v1345_v55 }
 0x3f7   : > { %v2130_v16 = vpop.eup %2129  ;;  %1578 = vst [vmem:[%s3135_s25 + $0xa0] sm:$0xff] %v1546_v11  ;;  %v1413_v14 = vadd.f32 1e-05, %v1381_v23 }
 0x3f8   : > { %v2132_v4 = vpop.eup %2131  ;;  %v1471_v21 = vmul.f32 %v2130_v16, %v3070_v61  ;;  %v1412_v43 = vadd.f32 1e-05, %v1380_v18  ;;  %v1351_v19 = vpop.xlane.xlu1 %1350 }
 0x3f9   : > { %v1470_v12 = vmul.f32 %v2132_v4, %v3073_v27  ;;  %2141 = vrsqrt.f32 %v1413_v14  ;;  %v1383_v35 = vmul.f32 0.0078125, %v1351_v19  ;;  %v1349_v28 = vpop.xlane.xlu0 %1348 }
 0x3fa   : > { %v1510_v62 = vmul.f32 %v3122_v59, %v1471_v21  ;;  %2143 = vrsqrt.f32 %v1412_v43  ;;  %v1382_v25 = vmul.f32 0.0078125, %v1349_v28 }
 0x3fb   : > { %v2134_v32 = vpop.eup %2133  ;;  %v1509_v44 = vmul.f32 %v3122_v59, %v1470_v12  ;;  %v1415_v38 = vadd.f32 1e-05, %v1383_v35 }
 0x3fc   : > { %v2136_v9 = vpop.eup %2135  ;;  %v1549_v61 = vadd.f32 %v3128_v31, %v1510_v62  ;;  %v1473_v37 = vmul.f32 %v2134_v32, %v3080_v0  ;;  %v1414_v27 = vadd.f32 1e-05, %v1382_v25 }
 0x3fd   : > { %v1548_v17 = vadd.f32 %v3128_v31, %v1509_v44  ;;  %v1472_v47 = vmul.f32 %v2136_v9, %v3083_v30  ;;  %2145 = vrsqrt.f32 %v1415_v38 }
 0x3fe   : > { %1581 = vst [vmem:[%s3135_s25 + $0xb8] sm:$0xff] %v1549_v61  ;;  %v1512_v51 = vmul.f32 %v3122_v59, %v1473_v37  ;;  %2147 = vrsqrt.f32 %v1414_v27 }
 0x3ff   : > { %v2138_v24 = vpop.eup %2137  ;;  %1580 = vst [vmem:[%s3135_s25 + $0xb0] sm:$0xff] %v1548_v17  ;;  %v1511_v3 = vmul.f32 %v3122_v59, %v1472_v47 }
 0x400   : > { %v2140_v7 = vpop.eup %2139  ;;  %v1551_v0 = vadd.f32 %v3128_v31, %v1512_v51  ;;  %v1475_v40 = vmul.f32 %v2138_v24, %v3090_v6 }
 0x401   : > { %v1550_v52 = vadd.f32 %v3128_v31, %v1511_v3  ;;  %v1474_v30 = vmul.f32 %v2140_v7, %v3093_v33 }
 0x402   : > { %1583 = vst [vmem:[%s3135_s25 + $0xc8] sm:$0xff] %v1551_v0  ;;  %v1514_v50 = vmul.f32 %v3122_v59, %v1475_v40 }
 0x403   : > { %v2142_v41 = vpop.eup %2141  ;;  %1582 = vst [vmem:[%s3135_s25 + $0xc0] sm:$0xff] %v1550_v52  ;;  %v1513_v45 = vmul.f32 %v3122_v59, %v1474_v30 }
 0x404   : > { %v2144_v46 = vpop.eup %2143  ;;  %v1553_v2 = vadd.f32 %v3128_v31, %v1514_v50  ;;  %v1477_v6 = vmul.f32 %v2142_v41, %v3100_v13 }
 0x405   : > { %v1552_v56 = vadd.f32 %v3128_v31, %v1513_v45  ;;  %v1476_v33 = vmul.f32 %v2144_v46, %v3103_v36 }
 0x406   : > { %1585 = vst [vmem:[%s3135_s25 + $0xd8] sm:$0xff] %v1553_v2  ;;  %v1516_v1 = vmul.f32 %v3122_v59, %v1477_v6 }
 0x407   : > { %v2146_v20 = vpop.eup %2145  ;;  %1584 = vst [vmem:[%s3135_s25 + $0xd0] sm:$0xff] %v1552_v56  ;;  %v1515_v5 = vmul.f32 %v3122_v59, %v1476_v33 }
 0x408   : > { %v2148_v54 = vpop.eup %2147  ;;  %v1555_v49 = vadd.f32 %v3128_v31, %v1516_v1  ;;  %v1479_v13 = vmul.f32 %v2146_v20, %v3110_v22 }
 0x409   : > { %v1554_v48 = vadd.f32 %v3128_v31, %v1515_v5  ;;  %v1478_v15 = vmul.f32 %v2148_v54, %v3113_v39 }
 0x40a   : > { %1587 = vst [vmem:[%s3135_s25 + $0xe8] sm:$0xff] %v1555_v49  ;;  %v1518_v36 = vmul.f32 %v3122_v59, %v1479_v13 }
 0x40b   : > { %1586 = vst [vmem:[%s3135_s25 + $0xe0] sm:$0xff] %v1554_v48  ;;  %v1517_v10 = vmul.f32 %v3122_v59, %v1478_v15 }
 0x40c   : > { %v1557_v34 = vadd.f32 %v3128_v31, %v1518_v36 }
 0x40d   : > { %v1556_v22 = vadd.f32 %v3128_v31, %v1517_v10 }
 0x40e   : > { %1589 = vst [vmem:[%s3135_s25 + $0xf8] sm:$0xff] %v1557_v34 }
 0x40f   : > { %1588 = vst [vmem:[%s3135_s25 + $0xf0] sm:$0xff] %v1556_v22 }
 0x410   : > { %2250 = shalt.err (!%p2247_p8)
}
 0x411   : > { %s2251_s17 = scalar_lea.hbm %s3263_s29, 4096  ;;  %s2255_s12 = scalar_lea.hbm %s3322_s5, 8192 }
 0x412   : > { %p2252_p11 = scmp.ne.s32.totalorder %s3263_s29, %s2251_s17  ;;  %p2256_p6 = scmp.lt.u32.totalorder %s3263_s29, %s3322_s5 }
 0x413   : > { %p2257_p13 = scmp.lt.u32.totalorder %s2255_s12, %s2251_s17  ;;  %p2259_p5 = scmp.lt.u32.totalorder %s2251_s17, %s3263_s29 }
 0x414   : > { %p2253_p12 = pnand %p2252_p11, %p2465_p10 }
 0x415   : > { %p2258_p0 = por %p2257_p13, %p2256_p6 }
 0x416   : > { %p2254_p3 = pneg %p2253_p12 }
 0x417   : > { %p2260_p9 = por %p2259_p5, %p2258_p0 }
 0x419   : > { %p2261_p1 = pnand %p2260_p9, %p2254_p3 }
 0x41b   : > { %2264 = shalt.err (!%p2261_p1)
}
 0x41c   : > { %s2338_s26 = smov 128   ;;  %s2339_s15 = smov 8  }
 0x41d   : > { %2008 = dma.vmem_to_hbm [thread:$0]  (%p2465_p10), %s3265_s0, 4096, %s3263_s29, %s1591_s21, %s2338_s26, %s2338_s26, %s2339_s15  }
 0x41e PF: > { %s1621_s30 = sand.u32 1, %s2307_s18   ;;  %p3352_p2 = scmp.ne.s32.totalorder %s3334_s27, 0 }
 0x41f   : > { %p3353_p7 = scmp.ge.s32.totalorder %s2327_s23, 2  ;;  %s1622_s25 = scalar_lea.sflag [#allocation5], %s1621_s30 }
 0x421   : > { %p2022_p4 = pnand %p3353_p7, %p3352_p2 }
 0x423   : > { %2302 = dma.done.wait (!%p2022_p4), %s1622_s25, 4096  }
 0x424   : > { %2304 = vsyncadd (!%p2022_p4), %s1622_s25, 4294963200  ;;  %s24_s23 = sadd.s32 1, %s2327_s23   ;;  %s3354_s14 = sld [smem:[#allocation14_spill]] }
 0x425   : > { %p21_p8 = scmp.ge.s32.totalorder %s24_s23, 4   ;;  %s3355_s20 = sld [smem:[#allocation16_spill]] }
 0x426   : > { %s3356_s6 = sld [smem:[#allocation15_spill]]  ;;  %s3357_s18 = smov %s2311_s19 }
 0x427   : > { %s3359_s21 = smov %s2323_s22  ;;  %23 = sbr.rel (!%p21_p8) target bundleno = 11 (0xb), region = 112 }
 0x42a   : > { %s3358_s19 = smov %s3354_s14 }
 0x42c   : > { %s3360_s22 = smov %s3356_s6 }
 0x42e   :  { %1627 = vsyncpa [#allocation4], 1 }
 0x42f   :  { %1629 = vsyncpa [#allocation4 + $0x1], 1 }
 0x430   :  { %1630 = vsyncpa [#allocation7], 1 }
 0x431   :  { %1632 = vsyncpa [#allocation7 + $0x1], 1 }
 0x432   :  { %1633 = vsyncpa [#allocation5], 1 }
 0x433   :  { %1635 = vsyncpa [#allocation5 + $0x1], 1 }

</bundles_post_ra>
